<compile_context>
chip_gen: v5e
topology: v5e:2x2
jax: 0.10.0
libtpu: 0.0.40
codegen_flags: <defaults>
</compile_context>

<pallas_src>
import functools

import jax
import jax.numpy as jnp
from jax import lax
from jax.experimental import pallas as pl
from jax.experimental.pallas import tpu as pltpu


def _dwconv3d_kernel(x_ref, w_ref, b_ref, o_ref, xw_ref, *, T, H, W, K):
    """Depthwise KxKxK conv (stride 1, pad (K-1)//2) for one (batch, channel-block).

    x_ref : (T, H, W, Dc)            input block (unpadded; padding built in VMEM)
    w_ref : (K*K, K, Dc)             taps [(kt*K+kh), kw, channel]; shortcut folded in
    b_ref : (1, Dc)                  bias
    o_ref : (T, H, W, Dc)            output block
    xw_ref: (K, T+2p, H+2p, W, Dc)   scratch: K W-pre-shifted zero-padded copies
    """
    dc = o_ref.shape[-1]
    f32 = jnp.float32
    out_dtype = o_ref.dtype

    # ---- Build the K W-pre-shifted, zero-padded copies of the block in VMEM.
    # Zeroing every grid step keeps the halo correct regardless of how the
    # "parallel" grid is sharded across TensorCores.
    xw_ref[...] = jnp.zeros(xw_ref.shape, xw_ref.dtype)
    xw_ref[1, 1:T + 1, 1:H + 1, :, :] = x_ref[...]                       # kw = 1
    if W > 1:
        xw_ref[0, 1:T + 1, 1:H + 1, 1:W, :] = x_ref[:, :, 0:W - 1, :]    # kw = 0
        xw_ref[2, 1:T + 1, 1:H + 1, 0:W - 1, :] = x_ref[:, :, 1:W, :]    # kw = 2

    # ---- Hoist loop-invariant weights / bias out of the row loop (JAX does not
    # CSE broadcast_in_dim inside loops).  Pre-broadcast to (W, Dc) only when that
    # is a single f32 vreg per tap, so the 27 hoisted taps never blow vreg budget.
    hoist_full = (W * dc) <= 1024
    if hoist_full:
        w_taps = [jnp.broadcast_to(w_ref[i, kw, :].astype(f32), (W, dc))
                  for i in range(K * K) for kw in range(K)]
        bias_row = jnp.broadcast_to(b_ref[0, :].astype(f32), (W, dc))
    else:
        w_taps = [w_ref[i, kw, :].astype(f32).reshape(1, dc)
                  for i in range(K * K) for kw in range(K)]
        bias_row = b_ref[...].astype(f32)                                # (1, Dc)

    # ---- Row-oriented tap loop: one (W, Dc) accumulator per output (t, h) row,
    # 27 aligned (W, Dc) loads + 27 mul/adds per row (f32 math on the VPU).
    def t_body(t, carry):
        def h_body(h, c):
            parts = []                      # K independent partial sums -> ILP
            for kt in range(K):
                part = None
                for kh in range(K):
                    for kw in range(K):
                        tap = (kt * K + kh) * K + kw
                        row = xw_ref[kw, t + kt, h + kh, :, :].astype(f32)
                        contrib = row * w_taps[tap]
                        part = contrib if part is None else part + contrib
                parts.append(part)
            acc = bias_row                  # bias-initialized accumulator
            for part in parts:
                acc = acc + part
            o_ref[t, h, :, :] = acc.astype(out_dtype)
            return c
        return lax.fori_loop(0, H, h_body, carry)

    lax.fori_loop(0, T, t_body, 0)


def _pick_channel_block(d, d_block):
    """Largest lane-aligned channel tile <= d_block that divides D (else full D)."""
    for cand in (d_block, 512, 384, 256, 128):
        if cand <= d_block and cand <= d and d % cand == 0:
            return cand
    return d


def depthwise_conv3d_pallas(x_bthwd, weight, bias, *, shortcut=True, d_block=256):
    """Depthwise 3x3x3 Conv3d (stride 1, padding 1, groups=D) + optional residual.

    x_bthwd: (B, T, H, W, D) channels-last; weight: (D, 1, K, K, K) PyTorch OIDHW;
    bias: (D,).  Returns (B, T, H, W, D) in x's dtype.
    """
    B, T, H, W, D = x_bthwd.shape
    K = weight.shape[-1]
    assert weight.shape == (D, 1, K, K, K), weight.shape
    assert K == 3, "DownSampler3d uses kernel_size=3, stride=1, padding=1"
    p = (K - 1) // 2

    # Taps laid out (kt*K + kh, kw, channel); channel on the lane axis.
    w_flat = weight.reshape(D, K * K * K).T.astype(jnp.float32)        # (K^3, D)
    if shortcut:
        # Residual shortcut == +1 on the center tap (exact identity); removes a
        # full-volume slice + add from the kernel.
        center = (K * K * K) // 2
        w_flat = w_flat.at[center, :].add(1.0)
    w3 = w_flat.reshape(K * K, K, D)
    b2 = bias.reshape(1, D).astype(jnp.float32)

    dc = _pick_channel_block(D, d_block)
    n_d = D // dc

    kernel = functools.partial(_dwconv3d_kernel, T=T, H=H, W=W, K=K)

    # VMEM budget: double-buffered in/out blocks + shifted-copy scratch + taps.
    itemsize = jnp.dtype(x_bthwd.dtype).itemsize
    blk_bytes = T * H * W * dc * itemsize
    xw_bytes = K * (T + 2 * p) * (H + 2 * p) * W * dc * itemsize
    w_bytes = 2 * (K * K * 8 * dc + dc) * 4
    need = 4 * blk_bytes + xw_bytes + w_bytes
    vmem_limit = int(min(max(need + (4 << 20), 16 << 20), 100 << 20))

    return pl.pallas_call(
        kernel,
        out_shape=jax.ShapeDtypeStruct((B, T, H, W, D), x_bthwd.dtype),
        grid_spec=pltpu.PrefetchScalarGridSpec(
            num_scalar_prefetch=0,
            grid=(B, n_d),
            in_specs=[
                pl.BlockSpec((None, T, H, W, dc),
                             lambda b, j: (b, 0, 0, 0, j)),
                pl.BlockSpec((K * K, K, dc), lambda b, j: (0, 0, j)),
                pl.BlockSpec((1, dc), lambda b, j: (0, j)),
            ],
            out_specs=pl.BlockSpec((None, T, H, W, dc),
                                   lambda b, j: (b, 0, 0, 0, j)),
            scratch_shapes=[
                pltpu.VMEM((K, T + 2 * p, H + 2 * p, W, dc), x_bthwd.dtype),
            ],
        ),
        compiler_params=pltpu.CompilerParams(
            dimension_semantics=("parallel", "parallel"),
            vmem_limit_bytes=vmem_limit,
        ),
    )(x_bthwd, w3, b2)


def downsampler3d_forward(x, attention_mask, t, h, w, *, weight, bias,
                          down_factor=(2, 2, 2), down_shortcut=True, d_block=256):
    """Mirrors DownSampler3d.forward.

    x:              (b, t*h*w, d)
    attention_mask: (b, 1, t*h*w)
    returns (x_out, mask_out) with
      x_out:    (b*dt*dh*dw, (t//dt)*(h//dh)*(w//dw), d)
      mask_out: (b*dt*dh*dw, 1, (t//dt)*(h//dh)*(w//dw))
    """
    b, seq, d = x.shape
    assert seq == t * h * w
    dt, dh, dw = down_factor

    # 'b (t h w) d -> b d t h w' (kept channels-last here: b t h w d)
    x5 = x.reshape(b, t, h, w, d)

    # depthwise conv3d + bias + shortcut (Pallas kernel; shortcut folded into taps)
    y = depthwise_conv3d_pallas(x5, weight, bias, shortcut=down_shortcut,
                                d_block=d_block)

    t2, h2, w2 = t // dt, h // dh, w // dw

    # 'b d (t dt) (h dh) (w dw) -> (b dt dh dw) (t h w) d'
    # (lane-dense: d stays last and is >=128 in production)
    y = y.reshape(b, t2, dt, h2, dh, w2, dw, d)
    y = jnp.transpose(y, (0, 2, 4, 6, 1, 3, 5, 7))
    y = y.reshape(b * dt * dh * dw, t2 * h2 * w2, d)

    # 'b 1 (t dt) (h dh) (w dw) -> (b dt dh dw) 1 (t h w)'
    m = attention_mask.reshape(b, 1, t2, dt, h2, dh, w2, dw)
    m = jnp.transpose(m, (0, 3, 5, 7, 1, 2, 4, 6))
    m = m.reshape(b * dt * dh * dw, 1, t2 * h2 * w2)

    return y, m


def _reference_conv(x5, weight, bias, shortcut):
    """Pure-JAX reference of the NCDHW depthwise Conv3d + shortcut."""
    xn = jnp.transpose(x5, (0, 4, 1, 2, 3))  # b d t h w
    out = jax.lax.conv_general_dilated(
        xn, weight, window_strides=(1, 1, 1),
        padding=((1, 1), (1, 1), (1, 1)),
        dimension_numbers=("NCDHW", "OIDHW", "NCDHW"),
        feature_group_count=xn.shape[1],
    )
    out = out + bias[None, :, None, None, None]
    if shortcut:
        out = out + xn
    return jnp.transpose(out, (0, 2, 3, 4, 1))  # back to b t h w d


if __name__ == "__main__":
    # Small shapes consistent with the module's forward (d kept lane-dense).
    b, t, h, w, d = 2, 4, 8, 8, 256
    K = 3
    down_factor = (2, 2, 2)

    key = jax.random.PRNGKey(0)
    kx, kw_, kb = jax.random.split(key, 3)
    x = jax.random.normal(kx, (b, t * h * w, d), dtype=jnp.float32)
    attention_mask = jnp.ones((b, 1, t * h * w), dtype=jnp.float32)

    # "Conv3d(dim, dim, kernel_size=3, stride=1, padding=1, groups=dim)" params.
    weight = 0.05 * jax.random.normal(kw_, (d, 1, K, K, K), dtype=jnp.float32)
    bias = 0.01 * jax.random.normal(kb, (d,), dtype=jnp.float32)

    y, m = downsampler3d_forward(
        x, attention_mask, t, h, w,
        weight=weight, bias=bias,
        down_factor=down_factor, down_shortcut=True,
        d_block=128,  # exercises the channel-tiling grid axis (D=256 -> 2 blocks)
    )
    y = jax.block_until_ready(y)
    m = jax.block_until_ready(m)

    dt, dh, dw = down_factor
    t2, h2, w2 = t // dt, h // dh, w // dw
    assert y.shape == (b * dt * dh * dw, t2 * h2 * w2, d)
    assert m.shape == (b * dt * dh * dw, 1, t2 * h2 * w2)

    # Numerical check of the Pallas conv against a pure-JAX reference.
    x5 = x.reshape(b, t, h, w, d)
    conv_pallas = depthwise_conv3d_pallas(x5, weight, bias, shortcut=True, d_block=128)
    conv_pallas = jax.block_until_ready(conv_pallas)
    conv_ref = _reference_conv(x5, weight, bias, shortcut=True)
    assert jnp.allclose(conv_pallas, conv_ref, atol=1e-4, rtol=1e-4), (
        float(jnp.max(jnp.abs(conv_pallas - conv_ref))))

    # End-to-end check including the space-to-batch rearrange.
    y_ref = conv_ref.reshape(b, t2, dt, h2, dh, w2, dw, d)
    y_ref = jnp.transpose(y_ref, (0, 2, 4, 6, 1, 3, 5, 7))
    y_ref = y_ref.reshape(b * dt * dh * dw, t2 * h2 * w2, d)
    assert jnp.allclose(y, y_ref, atol=1e-4, rtol=1e-4)

    print("KERNEL_OK")
</pallas_src>

<mosaic_0001>
module attributes {stable_mosaic.version = 11 : i64} {
  func.func @_dwconv3d_kernel(%arg0: i32, %arg1: i32, %arg2: memref<1x4x8x8x128xf32, #tpu.memory_space<vmem>>, %arg3: memref<9x3x128xf32, #tpu.memory_space<vmem>>, %arg4: memref<1x128xf32, #tpu.memory_space<vmem>>, %arg5: memref<1x4x8x8x128xf32, #tpu.memory_space<vmem>>, %arg6: memref<3x6x10x8x128xf32, #tpu.memory_space<vmem>>) attributes {dimension_semantics = [#tpu.dimension_semantics<parallel>, #tpu.dimension_semantics<parallel>], iteration_bounds = array<i64: 2, 2>, scalar_prefetch = 0 : i64, scratch_operands = 1 : i64, tpu.core_type = #tpu.core_type<tc>, window_params = [{transform_indices = @transform_0, window_bounds = array<i64: 1, 4, 8, 8, 128>}, {transform_indices = @transform_1, window_bounds = array<i64: 9, 3, 128>}, {transform_indices = @transform_2, window_bounds = array<i64: 1, 128>}, {transform_indices = @transform_3, window_bounds = array<i64: 1, 4, 8, 8, 128>}]} {
    %cst = arith.constant 0.000000e+00 : f32
    %0 = vector.broadcast %cst : f32 to vector<3x6x10x8x128xf32>
    %c0 = arith.constant 0 : index
    %c0_0 = arith.constant 0 : index
    %c0_1 = arith.constant 0 : index
    %c0_2 = arith.constant 0 : index
    %c0_3 = arith.constant 0 : index
    %1 = vector.load %arg6[%c0, %c0_0, %c0_1, %c0_2, %c0_3] : memref<3x6x10x8x128xf32, #tpu.memory_space<vmem>>, vector<3x6x10x8x128xf32>
    tpu.vector_store %arg6[%c0, %c0_0, %c0_1, %c0_2, %c0_3], %0 {strides = array<i32>} : memref<3x6x10x8x128xf32, #tpu.memory_space<vmem>>, vector<3x6x10x8x128xf32>,
    %c0_4 = arith.constant 0 : index
    %c0_5 = arith.constant 0 : index
    %c0_6 = arith.constant 0 : index
    %c0_7 = arith.constant 0 : index
    %c0_8 = arith.constant 0 : index
    %2 = vector.load %arg2[%c0_4, %c0_5, %c0_6, %c0_7, %c0_8] : memref<1x4x8x8x128xf32, #tpu.memory_space<vmem>>, vector<1x4x8x8x128xf32>
    %3 = vector.shape_cast %2 : vector<1x4x8x8x128xf32> to vector<4x8x8x128xf32>
    %c1 = arith.constant 1 : index
    %c1_9 = arith.constant 1 : index
    %c1_10 = arith.constant 1 : index
    %c0_11 = arith.constant 0 : index
    %c0_12 = arith.constant 0 : index
    %4 = vector.load %arg6[%c1, %c1_9, %c1_10, %c0_11, %c0_12] : memref<3x6x10x8x128xf32, #tpu.memory_space<vmem>>, vector<1x4x8x8x128xf32>
    %5 = vector.shape_cast %4 : vector<1x4x8x8x128xf32> to vector<4x8x8x128xf32>
    %6 = vector.shape_cast %3 : vector<4x8x8x128xf32> to vector<1x4x8x8x128xf32>
    tpu.vector_store %arg6[%c1, %c1_9, %c1_10, %c0_11, %c0_12], %6 {strides = array<i32>} : memref<3x6x10x8x128xf32, #tpu.memory_space<vmem>>, vector<1x4x8x8x128xf32>,
    %c0_13 = arith.constant 0 : index
    %c0_14 = arith.constant 0 : index
    %c0_15 = arith.constant 0 : index
    %c0_16 = arith.constant 0 : index
    %c0_17 = arith.constant 0 : index
    %7 = vector.load %arg2[%c0_13, %c0_14, %c0_15, %c0_16, %c0_17] : memref<1x4x8x8x128xf32, #tpu.memory_space<vmem>>, vector<1x4x8x7x128xf32>
    %8 = vector.shape_cast %7 : vector<1x4x8x7x128xf32> to vector<4x8x7x128xf32>
    %c0_18 = arith.constant 0 : index
    %c1_19 = arith.constant 1 : index
    %c1_20 = arith.constant 1 : index
    %c1_21 = arith.constant 1 : index
    %c0_22 = arith.constant 0 : index
    %9 = vector.load %arg6[%c0_18, %c1_19, %c1_20, %c1_21, %c0_22] : memref<3x6x10x8x128xf32, #tpu.memory_space<vmem>>, vector<1x4x8x7x128xf32>
    %10 = vector.shape_cast %9 : vector<1x4x8x7x128xf32> to vector<4x8x7x128xf32>
    %11 = vector.shape_cast %8 : vector<4x8x7x128xf32> to vector<1x4x8x7x128xf32>
    tpu.vector_store %arg6[%c0_18, %c1_19, %c1_20, %c1_21, %c0_22], %11 {strides = array<i32>} : memref<3x6x10x8x128xf32, #tpu.memory_space<vmem>>, vector<1x4x8x7x128xf32>,
    %c0_23 = arith.constant 0 : index
    %c0_24 = arith.constant 0 : index
    %c0_25 = arith.constant 0 : index
    %c1_26 = arith.constant 1 : index
    %c0_27 = arith.constant 0 : index
    %12 = vector.load %arg2[%c0_23, %c0_24, %c0_25, %c1_26, %c0_27] : memref<1x4x8x8x128xf32, #tpu.memory_space<vmem>>, vector<1x4x8x7x128xf32>
    %13 = vector.shape_cast %12 : vector<1x4x8x7x128xf32> to vector<4x8x7x128xf32>
    %c2 = arith.constant 2 : index
    %c1_28 = arith.constant 1 : index
    %c1_29 = arith.constant 1 : index
    %c0_30 = arith.constant 0 : index
    %c0_31 = arith.constant 0 : index
    %14 = vector.load %arg6[%c2, %c1_28, %c1_29, %c0_30, %c0_31] : memref<3x6x10x8x128xf32, #tpu.memory_space<vmem>>, vector<1x4x8x7x128xf32>
    %15 = vector.shape_cast %14 : vector<1x4x8x7x128xf32> to vector<4x8x7x128xf32>
    %16 = vector.shape_cast %13 : vector<4x8x7x128xf32> to vector<1x4x8x7x128xf32>
    tpu.vector_store %arg6[%c2, %c1_28, %c1_29, %c0_30, %c0_31], %16 {strides = array<i32>} : memref<3x6x10x8x128xf32, #tpu.memory_space<vmem>>, vector<1x4x8x7x128xf32>,
    %c0_32 = arith.constant 0 : index
    %c0_33 = arith.constant 0 : index
    %c0_34 = arith.constant 0 : index
    %17 = vector.load %arg3[%c0_32, %c0_33, %c0_34] : memref<9x3x128xf32, #tpu.memory_space<vmem>>, vector<1x1x128xf32>
    %18 = vector.shape_cast %17 : vector<1x1x128xf32> to vector<128xf32>
    %19 = vector.shape_cast %18 : vector<128xf32> to vector<1x128xf32>
    %20 = vector.broadcast %19 : vector<1x128xf32> to vector<8x128xf32>
    %c0_35 = arith.constant 0 : index
    %c1_36 = arith.constant 1 : index
    %c0_37 = arith.constant 0 : index
    %21 = vector.load %arg3[%c0_35, %c1_36, %c0_37] : memref<9x3x128xf32, #tpu.memory_space<vmem>>, vector<1x1x128xf32>
    %22 = vector.shape_cast %21 : vector<1x1x128xf32> to vector<128xf32>
    %23 = vector.shape_cast %22 : vector<128xf32> to vector<1x128xf32>
    %24 = vector.broadcast %23 : vector<1x128xf32> to vector<8x128xf32>
    %c0_38 = arith.constant 0 : index
    %c2_39 = arith.constant 2 : index
    %c0_40 = arith.constant 0 : index
    %25 = vector.load %arg3[%c0_38, %c2_39, %c0_40] : memref<9x3x128xf32, #tpu.memory_space<vmem>>, vector<1x1x128xf32>
    %26 = vector.shape_cast %25 : vector<1x1x128xf32> to vector<128xf32>
    %27 = vector.shape_cast %26 : vector<128xf32> to vector<1x128xf32>
    %28 = vector.broadcast %27 : vector<1x128xf32> to vector<8x128xf32>
    %c1_41 = arith.constant 1 : index
    %c0_42 = arith.constant 0 : index
    %c0_43 = arith.constant 0 : index
    %29 = vector.load %arg3[%c1_41, %c0_42, %c0_43] : memref<9x3x128xf32, #tpu.memory_space<vmem>>, vector<1x1x128xf32>
    %30 = vector.shape_cast %29 : vector<1x1x128xf32> to vector<128xf32>
    %31 = vector.shape_cast %30 : vector<128xf32> to vector<1x128xf32>
    %32 = vector.broadcast %31 : vector<1x128xf32> to vector<8x128xf32>
    %c1_44 = arith.constant 1 : index
    %c1_45 = arith.constant 1 : index
    %c0_46 = arith.constant 0 : index
    %33 = vector.load %arg3[%c1_44, %c1_45, %c0_46] : memref<9x3x128xf32, #tpu.memory_space<vmem>>, vector<1x1x128xf32>
    %34 = vector.shape_cast %33 : vector<1x1x128xf32> to vector<128xf32>
    %35 = vector.shape_cast %34 : vector<128xf32> to vector<1x128xf32>
    %36 = vector.broadcast %35 : vector<1x128xf32> to vector<8x128xf32>
    %c1_47 = arith.constant 1 : index
    %c2_48 = arith.constant 2 : index
    %c0_49 = arith.constant 0 : index
    %37 = vector.load %arg3[%c1_47, %c2_48, %c0_49] : memref<9x3x128xf32, #tpu.memory_space<vmem>>, vector<1x1x128xf32>
    %38 = vector.shape_cast %37 : vector<1x1x128xf32> to vector<128xf32>
    %39 = vector.shape_cast %38 : vector<128xf32> to vector<1x128xf32>
    %40 = vector.broadcast %39 : vector<1x128xf32> to vector<8x128xf32>
    %c2_50 = arith.constant 2 : index
    %c0_51 = arith.constant 0 : index
    %c0_52 = arith.constant 0 : index
    %41 = vector.load %arg3[%c2_50, %c0_51, %c0_52] : memref<9x3x128xf32, #tpu.memory_space<vmem>>, vector<1x1x128xf32>
    %42 = vector.shape_cast %41 : vector<1x1x128xf32> to vector<128xf32>
    %43 = vector.shape_cast %42 : vector<128xf32> to vector<1x128xf32>
    %44 = vector.broadcast %43 : vector<1x128xf32> to vector<8x128xf32>
    %c2_53 = arith.constant 2 : index
    %c1_54 = arith.constant 1 : index
    %c0_55 = arith.constant 0 : index
    %45 = vector.load %arg3[%c2_53, %c1_54, %c0_55] : memref<9x3x128xf32, #tpu.memory_space<vmem>>, vector<1x1x128xf32>
    %46 = vector.shape_cast %45 : vector<1x1x128xf32> to vector<128xf32>
    %47 = vector.shape_cast %46 : vector<128xf32> to vector<1x128xf32>
    %48 = vector.broadcast %47 : vector<1x128xf32> to vector<8x128xf32>
    %c2_56 = arith.constant 2 : index
    %c2_57 = arith.constant 2 : index
    %c0_58 = arith.constant 0 : index
    %49 = vector.load %arg3[%c2_56, %c2_57, %c0_58] : memref<9x3x128xf32, #tpu.memory_space<vmem>>, vector<1x1x128xf32>
    %50 = vector.shape_cast %49 : vector<1x1x128xf32> to vector<128xf32>
    %51 = vector.shape_cast %50 : vector<128xf32> to vector<1x128xf32>
    %52 = vector.broadcast %51 : vector<1x128xf32> to vector<8x128xf32>
    %c3 = arith.constant 3 : index
    %c0_59 = arith.constant 0 : index
    %c0_60 = arith.constant 0 : index
    %53 = vector.load %arg3[%c3, %c0_59, %c0_60] : memref<9x3x128xf32, #tpu.memory_space<vmem>>, vector<1x1x128xf32>
    %54 = vector.shape_cast %53 : vector<1x1x128xf32> to vector<128xf32>
    %55 = vector.shape_cast %54 : vector<128xf32> to vector<1x128xf32>
    %56 = vector.broadcast %55 : vector<1x128xf32> to vector<8x128xf32>
    %c3_61 = arith.constant 3 : index
    %c1_62 = arith.constant 1 : index
    %c0_63 = arith.constant 0 : index
    %57 = vector.load %arg3[%c3_61, %c1_62, %c0_63] : memref<9x3x128xf32, #tpu.memory_space<vmem>>, vector<1x1x128xf32>
    %58 = vector.shape_cast %57 : vector<1x1x128xf32> to vector<128xf32>
    %59 = vector.shape_cast %58 : vector<128xf32> to vector<1x128xf32>
    %60 = vector.broadcast %59 : vector<1x128xf32> to vector<8x128xf32>
    %c3_64 = arith.constant 3 : index
    %c2_65 = arith.constant 2 : index
    %c0_66 = arith.constant 0 : index
    %61 = vector.load %arg3[%c3_64, %c2_65, %c0_66] : memref<9x3x128xf32, #tpu.memory_space<vmem>>, vector<1x1x128xf32>
    %62 = vector.shape_cast %61 : vector<1x1x128xf32> to vector<128xf32>
    %63 = vector.shape_cast %62 : vector<128xf32> to vector<1x128xf32>
    %64 = vector.broadcast %63 : vector<1x128xf32> to vector<8x128xf32>
    %c4 = arith.constant 4 : index
    %c0_67 = arith.constant 0 : index
    %c0_68 = arith.constant 0 : index
    %65 = vector.load %arg3[%c4, %c0_67, %c0_68] : memref<9x3x128xf32, #tpu.memory_space<vmem>>, vector<1x1x128xf32>
    %66 = vector.shape_cast %65 : vector<1x1x128xf32> to vector<128xf32>
    %67 = vector.shape_cast %66 : vector<128xf32> to vector<1x128xf32>
    %68 = vector.broadcast %67 : vector<1x128xf32> to vector<8x128xf32>
    %c4_69 = arith.constant 4 : index
    %c1_70 = arith.constant 1 : index
    %c0_71 = arith.constant 0 : index
    %69 = vector.load %arg3[%c4_69, %c1_70, %c0_71] : memref<9x3x128xf32, #tpu.memory_space<vmem>>, vector<1x1x128xf32>
    %70 = vector.shape_cast %69 : vector<1x1x128xf32> to vector<128xf32>
    %71 = vector.shape_cast %70 : vector<128xf32> to vector<1x128xf32>
    %72 = vector.broadcast %71 : vector<1x128xf32> to vector<8x128xf32>
    %c4_72 = arith.constant 4 : index
    %c2_73 = arith.constant 2 : index
    %c0_74 = arith.constant 0 : index
    %73 = vector.load %arg3[%c4_72, %c2_73, %c0_74] : memref<9x3x128xf32, #tpu.memory_space<vmem>>, vector<1x1x128xf32>
    %74 = vector.shape_cast %73 : vector<1x1x128xf32> to vector<128xf32>
    %75 = vector.shape_cast %74 : vector<128xf32> to vector<1x128xf32>
    %76 = vector.broadcast %75 : vector<1x128xf32> to vector<8x128xf32>
    %c5 = arith.constant 5 : index
    %c0_75 = arith.constant 0 : index
    %c0_76 = arith.constant 0 : index
    %77 = vector.load %arg3[%c5, %c0_75, %c0_76] : memref<9x3x128xf32, #tpu.memory_space<vmem>>, vector<1x1x128xf32>
    %78 = vector.shape_cast %77 : vector<1x1x128xf32> to vector<128xf32>
    %79 = vector.shape_cast %78 : vector<128xf32> to vector<1x128xf32>
    %80 = vector.broadcast %79 : vector<1x128xf32> to vector<8x128xf32>
    %c5_77 = arith.constant 5 : index
    %c1_78 = arith.constant 1 : index
    %c0_79 = arith.constant 0 : index
    %81 = vector.load %arg3[%c5_77, %c1_78, %c0_79] : memref<9x3x128xf32, #tpu.memory_space<vmem>>, vector<1x1x128xf32>
    %82 = vector.shape_cast %81 : vector<1x1x128xf32> to vector<128xf32>
    %83 = vector.shape_cast %82 : vector<128xf32> to vector<1x128xf32>
    %84 = vector.broadcast %83 : vector<1x128xf32> to vector<8x128xf32>
    %c5_80 = arith.constant 5 : index
    %c2_81 = arith.constant 2 : index
    %c0_82 = arith.constant 0 : index
    %85 = vector.load %arg3[%c5_80, %c2_81, %c0_82] : memref<9x3x128xf32, #tpu.memory_space<vmem>>, vector<1x1x128xf32>
    %86 = vector.shape_cast %85 : vector<1x1x128xf32> to vector<128xf32>
    %87 = vector.shape_cast %86 : vector<128xf32> to vector<1x128xf32>
    %88 = vector.broadcast %87 : vector<1x128xf32> to vector<8x128xf32>
    %c6 = arith.constant 6 : index
    %c0_83 = arith.constant 0 : index
    %c0_84 = arith.constant 0 : index
    %89 = vector.load %arg3[%c6, %c0_83, %c0_84] : memref<9x3x128xf32, #tpu.memory_space<vmem>>, vector<1x1x128xf32>
    %90 = vector.shape_cast %89 : vector<1x1x128xf32> to vector<128xf32>
    %91 = vector.shape_cast %90 : vector<128xf32> to vector<1x128xf32>
    %92 = vector.broadcast %91 : vector<1x128xf32> to vector<8x128xf32>
    %c6_85 = arith.constant 6 : index
    %c1_86 = arith.constant 1 : index
    %c0_87 = arith.constant 0 : index
    %93 = vector.load %arg3[%c6_85, %c1_86, %c0_87] : memref<9x3x128xf32, #tpu.memory_space<vmem>>, vector<1x1x128xf32>
    %94 = vector.shape_cast %93 : vector<1x1x128xf32> to vector<128xf32>
    %95 = vector.shape_cast %94 : vector<128xf32> to vector<1x128xf32>
    %96 = vector.broadcast %95 : vector<1x128xf32> to vector<8x128xf32>
    %c6_88 = arith.constant 6 : index
    %c2_89 = arith.constant 2 : index
    %c0_90 = arith.constant 0 : index
    %97 = vector.load %arg3[%c6_88, %c2_89, %c0_90] : memref<9x3x128xf32, #tpu.memory_space<vmem>>, vector<1x1x128xf32>
    %98 = vector.shape_cast %97 : vector<1x1x128xf32> to vector<128xf32>
    %99 = vector.shape_cast %98 : vector<128xf32> to vector<1x128xf32>
    %100 = vector.broadcast %99 : vector<1x128xf32> to vector<8x128xf32>
    %c7 = arith.constant 7 : index
    %c0_91 = arith.constant 0 : index
    %c0_92 = arith.constant 0 : index
    %101 = vector.load %arg3[%c7, %c0_91, %c0_92] : memref<9x3x128xf32, #tpu.memory_space<vmem>>, vector<1x1x128xf32>
    %102 = vector.shape_cast %101 : vector<1x1x128xf32> to vector<128xf32>
    %103 = vector.shape_cast %102 : vector<128xf32> to vector<1x128xf32>
    %104 = vector.broadcast %103 : vector<1x128xf32> to vector<8x128xf32>
    %c7_93 = arith.constant 7 : index
    %c1_94 = arith.constant 1 : index
    %c0_95 = arith.constant 0 : index
    %105 = vector.load %arg3[%c7_93, %c1_94, %c0_95] : memref<9x3x128xf32, #tpu.memory_space<vmem>>, vector<1x1x128xf32>
    %106 = vector.shape_cast %105 : vector<1x1x128xf32> to vector<128xf32>
    %107 = vector.shape_cast %106 : vector<128xf32> to vector<1x128xf32>
    %108 = vector.broadcast %107 : vector<1x128xf32> to vector<8x128xf32>
    %c7_96 = arith.constant 7 : index
    %c2_97 = arith.constant 2 : index
    %c0_98 = arith.constant 0 : index
    %109 = vector.load %arg3[%c7_96, %c2_97, %c0_98] : memref<9x3x128xf32, #tpu.memory_space<vmem>>, vector<1x1x128xf32>
    %110 = vector.shape_cast %109 : vector<1x1x128xf32> to vector<128xf32>
    %111 = vector.shape_cast %110 : vector<128xf32> to vector<1x128xf32>
    %112 = vector.broadcast %111 : vector<1x128xf32> to vector<8x128xf32>
    %c8 = arith.constant 8 : index
    %c0_99 = arith.constant 0 : index
    %c0_100 = arith.constant 0 : index
    %113 = vector.load %arg3[%c8, %c0_99, %c0_100] : memref<9x3x128xf32, #tpu.memory_space<vmem>>, vector<1x1x128xf32>
    %114 = vector.shape_cast %113 : vector<1x1x128xf32> to vector<128xf32>
    %115 = vector.shape_cast %114 : vector<128xf32> to vector<1x128xf32>
    %116 = vector.broadcast %115 : vector<1x128xf32> to vector<8x128xf32>
    %c8_101 = arith.constant 8 : index
    %c1_102 = arith.constant 1 : index
    %c0_103 = arith.constant 0 : index
    %117 = vector.load %arg3[%c8_101, %c1_102, %c0_103] : memref<9x3x128xf32, #tpu.memory_space<vmem>>, vector<1x1x128xf32>
    %118 = vector.shape_cast %117 : vector<1x1x128xf32> to vector<128xf32>
    %119 = vector.shape_cast %118 : vector<128xf32> to vector<1x128xf32>
    %120 = vector.broadcast %119 : vector<1x128xf32> to vector<8x128xf32>
    %c8_104 = arith.constant 8 : index
    %c2_105 = arith.constant 2 : index
    %c0_106 = arith.constant 0 : index
    %121 = vector.load %arg3[%c8_104, %c2_105, %c0_106] : memref<9x3x128xf32, #tpu.memory_space<vmem>>, vector<1x1x128xf32>
    %122 = vector.shape_cast %121 : vector<1x1x128xf32> to vector<128xf32>
    %123 = vector.shape_cast %122 : vector<128xf32> to vector<1x128xf32>
    %124 = vector.broadcast %123 : vector<1x128xf32> to vector<8x128xf32>
    %c0_107 = arith.constant 0 : index
    %c0_108 = arith.constant 0 : index
    %125 = vector.load %arg4[%c0_107, %c0_108] : memref<1x128xf32, #tpu.memory_space<vmem>>, vector<1x128xf32>
    %126 = vector.shape_cast %125 : vector<1x128xf32> to vector<128xf32>
    %127 = vector.shape_cast %126 : vector<128xf32> to vector<1x128xf32>
    %128 = vector.broadcast %127 : vector<1x128xf32> to vector<8x128xf32>
    %c0_i32 = arith.constant 0 : i32
    %c4_i32 = arith.constant 4 : i32
    %129 = arith.addi %c0_i32, %c4_i32 : i32
    %c1_i32 = arith.constant 1 : i32
    scf.for %arg7 = %c0_i32 to %129 step %c1_i32  : i32 {
      %c0_i32_110 = arith.constant 0 : i32
      %c8_i32 = arith.constant 8 : i32
      %130 = arith.addi %c0_i32_110, %c8_i32 : i32
      %c1_i32_111 = arith.constant 1 : i32
      scf.for %arg8 = %c0_i32_110 to %130 step %c1_i32_111  : i32 {
        %c0_i32_113 = arith.constant 0 : i32
        %131 = arith.addi %arg7, %c0_i32_113 : i32
        %c0_i32_114 = arith.constant 0 : i32
        %132 = arith.addi %arg8, %c0_i32_114 : i32
        %c0_115 = arith.constant 0 : index
        %133 = arith.index_cast %131 : i32 to index
        %134 = arith.index_cast %132 : i32 to index
        %c0_116 = arith.constant 0 : index
        %c0_117 = arith.constant 0 : index
        %135 = vector.load %arg6[%c0_115, %133, %134, %c0_116, %c0_117] : memref<3x6x10x8x128xf32, #tpu.memory_space<vmem>>, vector<1x1x1x8x128xf32>
        %136 = vector.shape_cast %135 : vector<1x1x1x8x128xf32> to vector<8x128xf32>
        %137 = arith.mulf %136, %20 : vector<8x128xf32>
        %c0_i32_118 = arith.constant 0 : i32
        %138 = arith.addi %arg7, %c0_i32_118 : i32
        %c0_i32_119 = arith.constant 0 : i32
        %139 = arith.addi %arg8, %c0_i32_119 : i32
        %c1_120 = arith.constant 1 : index
        %140 = arith.index_cast %138 : i32 to index
        %141 = arith.index_cast %139 : i32 to index
        %c0_121 = arith.constant 0 : index
        %c0_122 = arith.constant 0 : index
        %142 = vector.load %arg6[%c1_120, %140, %141, %c0_121, %c0_122] : memref<3x6x10x8x128xf32, #tpu.memory_space<vmem>>, vector<1x1x1x8x128xf32>
        %143 = vector.shape_cast %142 : vector<1x1x1x8x128xf32> to vector<8x128xf32>
        %144 = arith.mulf %143, %24 : vector<8x128xf32>
        %145 = arith.addf %137, %144 : vector<8x128xf32>
        %c0_i32_123 = arith.constant 0 : i32
        %146 = arith.addi %arg7, %c0_i32_123 : i32
        %c0_i32_124 = arith.constant 0 : i32
        %147 = arith.addi %arg8, %c0_i32_124 : i32
        %c2_125 = arith.constant 2 : index
        %148 = arith.index_cast %146 : i32 to index
        %149 = arith.index_cast %147 : i32 to index
        %c0_126 = arith.constant 0 : index
        %c0_127 = arith.constant 0 : index
        %150 = vector.load %arg6[%c2_125, %148, %149, %c0_126, %c0_127] : memref<3x6x10x8x128xf32, #tpu.memory_space<vmem>>, vector<1x1x1x8x128xf32>
        %151 = vector.shape_cast %150 : vector<1x1x1x8x128xf32> to vector<8x128xf32>
        %152 = arith.mulf %151, %28 : vector<8x128xf32>
        %153 = arith.addf %145, %152 : vector<8x128xf32>
        %c0_i32_128 = arith.constant 0 : i32
        %154 = arith.addi %arg7, %c0_i32_128 : i32
        %c1_i32_129 = arith.constant 1 : i32
        %155 = arith.addi %arg8, %c1_i32_129 : i32
        %c0_130 = arith.constant 0 : index
        %156 = arith.index_cast %154 : i32 to index
        %157 = arith.index_cast %155 : i32 to index
        %c0_131 = arith.constant 0 : index
        %c0_132 = arith.constant 0 : index
        %158 = vector.load %arg6[%c0_130, %156, %157, %c0_131, %c0_132] : memref<3x6x10x8x128xf32, #tpu.memory_space<vmem>>, vector<1x1x1x8x128xf32>
        %159 = vector.shape_cast %158 : vector<1x1x1x8x128xf32> to vector<8x128xf32>
        %160 = arith.mulf %159, %32 : vector<8x128xf32>
        %161 = arith.addf %153, %160 : vector<8x128xf32>
        %c0_i32_133 = arith.constant 0 : i32
        %162 = arith.addi %arg7, %c0_i32_133 : i32
        %c1_i32_134 = arith.constant 1 : i32
        %163 = arith.addi %arg8, %c1_i32_134 : i32
        %c1_135 = arith.constant 1 : index
        %164 = arith.index_cast %162 : i32 to index
        %165 = arith.index_cast %163 : i32 to index
        %c0_136 = arith.constant 0 : index
        %c0_137 = arith.constant 0 : index
        %166 = vector.load %arg6[%c1_135, %164, %165, %c0_136, %c0_137] : memref<3x6x10x8x128xf32, #tpu.memory_space<vmem>>, vector<1x1x1x8x128xf32>
        %167 = vector.shape_cast %166 : vector<1x1x1x8x128xf32> to vector<8x128xf32>
        %168 = arith.mulf %167, %36 : vector<8x128xf32>
        %169 = arith.addf %161, %168 : vector<8x128xf32>
        %c0_i32_138 = arith.constant 0 : i32
        %170 = arith.addi %arg7, %c0_i32_138 : i32
        %c1_i32_139 = arith.constant 1 : i32
        %171 = arith.addi %arg8, %c1_i32_139 : i32
        %c2_140 = arith.constant 2 : index
        %172 = arith.index_cast %170 : i32 to index
        %173 = arith.index_cast %171 : i32 to index
        %c0_141 = arith.constant 0 : index
        %c0_142 = arith.constant 0 : index
        %174 = vector.load %arg6[%c2_140, %172, %173, %c0_141, %c0_142] : memref<3x6x10x8x128xf32, #tpu.memory_space<vmem>>, vector<1x1x1x8x128xf32>
        %175 = vector.shape_cast %174 : vector<1x1x1x8x128xf32> to vector<8x128xf32>
        %176 = arith.mulf %175, %40 : vector<8x128xf32>
        %177 = arith.addf %169, %176 : vector<8x128xf32>
        %c0_i32_143 = arith.constant 0 : i32
        %178 = arith.addi %arg7, %c0_i32_143 : i32
        %c2_i32 = arith.constant 2 : i32
        %179 = arith.addi %arg8, %c2_i32 : i32
        %c0_144 = arith.constant 0 : index
        %180 = arith.index_cast %178 : i32 to index
        %181 = arith.index_cast %179 : i32 to index
        %c0_145 = arith.constant 0 : index
        %c0_146 = arith.constant 0 : index
        %182 = vector.load %arg6[%c0_144, %180, %181, %c0_145, %c0_146] : memref<3x6x10x8x128xf32, #tpu.memory_space<vmem>>, vector<1x1x1x8x128xf32>
        %183 = vector.shape_cast %182 : vector<1x1x1x8x128xf32> to vector<8x128xf32>
        %184 = arith.mulf %183, %44 : vector<8x128xf32>
        %185 = arith.addf %177, %184 : vector<8x128xf32>
        %c0_i32_147 = arith.constant 0 : i32
        %186 = arith.addi %arg7, %c0_i32_147 : i32
        %c2_i32_148 = arith.constant 2 : i32
        %187 = arith.addi %arg8, %c2_i32_148 : i32
        %c1_149 = arith.constant 1 : index
        %188 = arith.index_cast %186 : i32 to index
        %189 = arith.index_cast %187 : i32 to index
        %c0_150 = arith.constant 0 : index
        %c0_151 = arith.constant 0 : index
        %190 = vector.load %arg6[%c1_149, %188, %189, %c0_150, %c0_151] : memref<3x6x10x8x128xf32, #tpu.memory_space<vmem>>, vector<1x1x1x8x128xf32>
        %191 = vector.shape_cast %190 : vector<1x1x1x8x128xf32> to vector<8x128xf32>
        %192 = arith.mulf %191, %48 : vector<8x128xf32>
        %193 = arith.addf %185, %192 : vector<8x128xf32>
        %c0_i32_152 = arith.constant 0 : i32
        %194 = arith.addi %arg7, %c0_i32_152 : i32
        %c2_i32_153 = arith.constant 2 : i32
        %195 = arith.addi %arg8, %c2_i32_153 : i32
        %c2_154 = arith.constant 2 : index
        %196 = arith.index_cast %194 : i32 to index
        %197 = arith.index_cast %195 : i32 to index
        %c0_155 = arith.constant 0 : index
        %c0_156 = arith.constant 0 : index
        %198 = vector.load %arg6[%c2_154, %196, %197, %c0_155, %c0_156] : memref<3x6x10x8x128xf32, #tpu.memory_space<vmem>>, vector<1x1x1x8x128xf32>
        %199 = vector.shape_cast %198 : vector<1x1x1x8x128xf32> to vector<8x128xf32>
        %200 = arith.mulf %199, %52 : vector<8x128xf32>
        %201 = arith.addf %193, %200 : vector<8x128xf32>
        %c1_i32_157 = arith.constant 1 : i32
        %202 = arith.addi %arg7, %c1_i32_157 : i32
        %c0_i32_158 = arith.constant 0 : i32
        %203 = arith.addi %arg8, %c0_i32_158 : i32
        %c0_159 = arith.constant 0 : index
        %204 = arith.index_cast %202 : i32 to index
        %205 = arith.index_cast %203 : i32 to index
        %c0_160 = arith.constant 0 : index
        %c0_161 = arith.constant 0 : index
        %206 = vector.load %arg6[%c0_159, %204, %205, %c0_160, %c0_161] : memref<3x6x10x8x128xf32, #tpu.memory_space<vmem>>, vector<1x1x1x8x128xf32>
        %207 = vector.shape_cast %206 : vector<1x1x1x8x128xf32> to vector<8x128xf32>
        %208 = arith.mulf %207, %56 : vector<8x128xf32>
        %c1_i32_162 = arith.constant 1 : i32
        %209 = arith.addi %arg7, %c1_i32_162 : i32
        %c0_i32_163 = arith.constant 0 : i32
        %210 = arith.addi %arg8, %c0_i32_163 : i32
        %c1_164 = arith.constant 1 : index
        %211 = arith.index_cast %209 : i32 to index
        %212 = arith.index_cast %210 : i32 to index
        %c0_165 = arith.constant 0 : index
        %c0_166 = arith.constant 0 : index
        %213 = vector.load %arg6[%c1_164, %211, %212, %c0_165, %c0_166] : memref<3x6x10x8x128xf32, #tpu.memory_space<vmem>>, vector<1x1x1x8x128xf32>
        %214 = vector.shape_cast %213 : vector<1x1x1x8x128xf32> to vector<8x128xf32>
        %215 = arith.mulf %214, %60 : vector<8x128xf32>
        %216 = arith.addf %208, %215 : vector<8x128xf32>
        %c1_i32_167 = arith.constant 1 : i32
        %217 = arith.addi %arg7, %c1_i32_167 : i32
        %c0_i32_168 = arith.constant 0 : i32
        %218 = arith.addi %arg8, %c0_i32_168 : i32
        %c2_169 = arith.constant 2 : index
        %219 = arith.index_cast %217 : i32 to index
        %220 = arith.index_cast %218 : i32 to index
        %c0_170 = arith.constant 0 : index
        %c0_171 = arith.constant 0 : index
        %221 = vector.load %arg6[%c2_169, %219, %220, %c0_170, %c0_171] : memref<3x6x10x8x128xf32, #tpu.memory_space<vmem>>, vector<1x1x1x8x128xf32>
        %222 = vector.shape_cast %221 : vector<1x1x1x8x128xf32> to vector<8x128xf32>
        %223 = arith.mulf %222, %64 : vector<8x128xf32>
        %224 = arith.addf %216, %223 : vector<8x128xf32>
        %c1_i32_172 = arith.constant 1 : i32
        %225 = arith.addi %arg7, %c1_i32_172 : i32
        %c1_i32_173 = arith.constant 1 : i32
        %226 = arith.addi %arg8, %c1_i32_173 : i32
        %c0_174 = arith.constant 0 : index
        %227 = arith.index_cast %225 : i32 to index
        %228 = arith.index_cast %226 : i32 to index
        %c0_175 = arith.constant 0 : index
        %c0_176 = arith.constant 0 : index
        %229 = vector.load %arg6[%c0_174, %227, %228, %c0_175, %c0_176] : memref<3x6x10x8x128xf32, #tpu.memory_space<vmem>>, vector<1x1x1x8x128xf32>
        %230 = vector.shape_cast %229 : vector<1x1x1x8x128xf32> to vector<8x128xf32>
        %231 = arith.mulf %230, %68 : vector<8x128xf32>
        %232 = arith.addf %224, %231 : vector<8x128xf32>
        %c1_i32_177 = arith.constant 1 : i32
        %233 = arith.addi %arg7, %c1_i32_177 : i32
        %c1_i32_178 = arith.constant 1 : i32
        %234 = arith.addi %arg8, %c1_i32_178 : i32
        %c1_179 = arith.constant 1 : index
        %235 = arith.index_cast %233 : i32 to index
        %236 = arith.index_cast %234 : i32 to index
        %c0_180 = arith.constant 0 : index
        %c0_181 = arith.constant 0 : index
        %237 = vector.load %arg6[%c1_179, %235, %236, %c0_180, %c0_181] : memref<3x6x10x8x128xf32, #tpu.memory_space<vmem>>, vector<1x1x1x8x128xf32>
        %238 = vector.shape_cast %237 : vector<1x1x1x8x128xf32> to vector<8x128xf32>
        %239 = arith.mulf %238, %72 : vector<8x128xf32>
        %240 = arith.addf %232, %239 : vector<8x128xf32>
        %c1_i32_182 = arith.constant 1 : i32
        %241 = arith.addi %arg7, %c1_i32_182 : i32
        %c1_i32_183 = arith.constant 1 : i32
        %242 = arith.addi %arg8, %c1_i32_183 : i32
        %c2_184 = arith.constant 2 : index
        %243 = arith.index_cast %241 : i32 to index
        %244 = arith.index_cast %242 : i32 to index
        %c0_185 = arith.constant 0 : index
        %c0_186 = arith.constant 0 : index
        %245 = vector.load %arg6[%c2_184, %243, %244, %c0_185, %c0_186] : memref<3x6x10x8x128xf32, #tpu.memory_space<vmem>>, vector<1x1x1x8x128xf32>
        %246 = vector.shape_cast %245 : vector<1x1x1x8x128xf32> to vector<8x128xf32>
        %247 = arith.mulf %246, %76 : vector<8x128xf32>
        %248 = arith.addf %240, %247 : vector<8x128xf32>
        %c1_i32_187 = arith.constant 1 : i32
        %249 = arith.addi %arg7, %c1_i32_187 : i32
        %c2_i32_188 = arith.constant 2 : i32
        %250 = arith.addi %arg8, %c2_i32_188 : i32
        %c0_189 = arith.constant 0 : index
        %251 = arith.index_cast %249 : i32 to index
        %252 = arith.index_cast %250 : i32 to index
        %c0_190 = arith.constant 0 : index
        %c0_191 = arith.constant 0 : index
        %253 = vector.load %arg6[%c0_189, %251, %252, %c0_190, %c0_191] : memref<3x6x10x8x128xf32, #tpu.memory_space<vmem>>, vector<1x1x1x8x128xf32>
        %254 = vector.shape_cast %253 : vector<1x1x1x8x128xf32> to vector<8x128xf32>
        %255 = arith.mulf %254, %80 : vector<8x128xf32>
        %256 = arith.addf %248, %255 : vector<8x128xf32>
        %c1_i32_192 = arith.constant 1 : i32
        %257 = arith.addi %arg7, %c1_i32_192 : i32
        %c2_i32_193 = arith.constant 2 : i32
        %258 = arith.addi %arg8, %c2_i32_193 : i32
        %c1_194 = arith.constant 1 : index
        %259 = arith.index_cast %257 : i32 to index
        %260 = arith.index_cast %258 : i32 to index
        %c0_195 = arith.constant 0 : index
        %c0_196 = arith.constant 0 : index
        %261 = vector.load %arg6[%c1_194, %259, %260, %c0_195, %c0_196] : memref<3x6x10x8x128xf32, #tpu.memory_space<vmem>>, vector<1x1x1x8x128xf32>
        %262 = vector.shape_cast %261 : vector<1x1x1x8x128xf32> to vector<8x128xf32>
        %263 = arith.mulf %262, %84 : vector<8x128xf32>
        %264 = arith.addf %256, %263 : vector<8x128xf32>
        %c1_i32_197 = arith.constant 1 : i32
        %265 = arith.addi %arg7, %c1_i32_197 : i32
        %c2_i32_198 = arith.constant 2 : i32
        %266 = arith.addi %arg8, %c2_i32_198 : i32
        %c2_199 = arith.constant 2 : index
        %267 = arith.index_cast %265 : i32 to index
        %268 = arith.index_cast %266 : i32 to index
        %c0_200 = arith.constant 0 : index
        %c0_201 = arith.constant 0 : index
        %269 = vector.load %arg6[%c2_199, %267, %268, %c0_200, %c0_201] : memref<3x6x10x8x128xf32, #tpu.memory_space<vmem>>, vector<1x1x1x8x128xf32>
        %270 = vector.shape_cast %269 : vector<1x1x1x8x128xf32> to vector<8x128xf32>
        %271 = arith.mulf %270, %88 : vector<8x128xf32>
        %272 = arith.addf %264, %271 : vector<8x128xf32>
        %c2_i32_202 = arith.constant 2 : i32
        %273 = arith.addi %arg7, %c2_i32_202 : i32
        %c0_i32_203 = arith.constant 0 : i32
        %274 = arith.addi %arg8, %c0_i32_203 : i32
        %c0_204 = arith.constant 0 : index
        %275 = arith.index_cast %273 : i32 to index
        %276 = arith.index_cast %274 : i32 to index
        %c0_205 = arith.constant 0 : index
        %c0_206 = arith.constant 0 : index
        %277 = vector.load %arg6[%c0_204, %275, %276, %c0_205, %c0_206] : memref<3x6x10x8x128xf32, #tpu.memory_space<vmem>>, vector<1x1x1x8x128xf32>
        %278 = vector.shape_cast %277 : vector<1x1x1x8x128xf32> to vector<8x128xf32>
        %279 = arith.mulf %278, %92 : vector<8x128xf32>
        %c2_i32_207 = arith.constant 2 : i32
        %280 = arith.addi %arg7, %c2_i32_207 : i32
        %c0_i32_208 = arith.constant 0 : i32
        %281 = arith.addi %arg8, %c0_i32_208 : i32
        %c1_209 = arith.constant 1 : index
        %282 = arith.index_cast %280 : i32 to index
        %283 = arith.index_cast %281 : i32 to index
        %c0_210 = arith.constant 0 : index
        %c0_211 = arith.constant 0 : index
        %284 = vector.load %arg6[%c1_209, %282, %283, %c0_210, %c0_211] : memref<3x6x10x8x128xf32, #tpu.memory_space<vmem>>, vector<1x1x1x8x128xf32>
        %285 = vector.shape_cast %284 : vector<1x1x1x8x128xf32> to vector<8x128xf32>
        %286 = arith.mulf %285, %96 : vector<8x128xf32>
        %287 = arith.addf %279, %286 : vector<8x128xf32>
        %c2_i32_212 = arith.constant 2 : i32
        %288 = arith.addi %arg7, %c2_i32_212 : i32
        %c0_i32_213 = arith.constant 0 : i32
        %289 = arith.addi %arg8, %c0_i32_213 : i32
        %c2_214 = arith.constant 2 : index
        %290 = arith.index_cast %288 : i32 to index
        %291 = arith.index_cast %289 : i32 to index
        %c0_215 = arith.constant 0 : index
        %c0_216 = arith.constant 0 : index
        %292 = vector.load %arg6[%c2_214, %290, %291, %c0_215, %c0_216] : memref<3x6x10x8x128xf32, #tpu.memory_space<vmem>>, vector<1x1x1x8x128xf32>
        %293 = vector.shape_cast %292 : vector<1x1x1x8x128xf32> to vector<8x128xf32>
        %294 = arith.mulf %293, %100 : vector<8x128xf32>
        %295 = arith.addf %287, %294 : vector<8x128xf32>
        %c2_i32_217 = arith.constant 2 : i32
        %296 = arith.addi %arg7, %c2_i32_217 : i32
        %c1_i32_218 = arith.constant 1 : i32
        %297 = arith.addi %arg8, %c1_i32_218 : i32
        %c0_219 = arith.constant 0 : index
        %298 = arith.index_cast %296 : i32 to index
        %299 = arith.index_cast %297 : i32 to index
        %c0_220 = arith.constant 0 : index
        %c0_221 = arith.constant 0 : index
        %300 = vector.load %arg6[%c0_219, %298, %299, %c0_220, %c0_221] : memref<3x6x10x8x128xf32, #tpu.memory_space<vmem>>, vector<1x1x1x8x128xf32>
        %301 = vector.shape_cast %300 : vector<1x1x1x8x128xf32> to vector<8x128xf32>
        %302 = arith.mulf %301, %104 : vector<8x128xf32>
        %303 = arith.addf %295, %302 : vector<8x128xf32>
        %c2_i32_222 = arith.constant 2 : i32
        %304 = arith.addi %arg7, %c2_i32_222 : i32
        %c1_i32_223 = arith.constant 1 : i32
        %305 = arith.addi %arg8, %c1_i32_223 : i32
        %c1_224 = arith.constant 1 : index
        %306 = arith.index_cast %304 : i32 to index
        %307 = arith.index_cast %305 : i32 to index
        %c0_225 = arith.constant 0 : index
        %c0_226 = arith.constant 0 : index
        %308 = vector.load %arg6[%c1_224, %306, %307, %c0_225, %c0_226] : memref<3x6x10x8x128xf32, #tpu.memory_space<vmem>>, vector<1x1x1x8x128xf32>
        %309 = vector.shape_cast %308 : vector<1x1x1x8x128xf32> to vector<8x128xf32>
        %310 = arith.mulf %309, %108 : vector<8x128xf32>
        %311 = arith.addf %303, %310 : vector<8x128xf32>
        %c2_i32_227 = arith.constant 2 : i32
        %312 = arith.addi %arg7, %c2_i32_227 : i32
        %c1_i32_228 = arith.constant 1 : i32
        %313 = arith.addi %arg8, %c1_i32_228 : i32
        %c2_229 = arith.constant 2 : index
        %314 = arith.index_cast %312 : i32 to index
        %315 = arith.index_cast %313 : i32 to index
        %c0_230 = arith.constant 0 : index
        %c0_231 = arith.constant 0 : index
        %316 = vector.load %arg6[%c2_229, %314, %315, %c0_230, %c0_231] : memref<3x6x10x8x128xf32, #tpu.memory_space<vmem>>, vector<1x1x1x8x128xf32>
        %317 = vector.shape_cast %316 : vector<1x1x1x8x128xf32> to vector<8x128xf32>
        %318 = arith.mulf %317, %112 : vector<8x128xf32>
        %319 = arith.addf %311, %318 : vector<8x128xf32>
        %c2_i32_232 = arith.constant 2 : i32
        %320 = arith.addi %arg7, %c2_i32_232 : i32
        %c2_i32_233 = arith.constant 2 : i32
        %321 = arith.addi %arg8, %c2_i32_233 : i32
        %c0_234 = arith.constant 0 : index
        %322 = arith.index_cast %320 : i32 to index
        %323 = arith.index_cast %321 : i32 to index
        %c0_235 = arith.constant 0 : index
        %c0_236 = arith.constant 0 : index
        %324 = vector.load %arg6[%c0_234, %322, %323, %c0_235, %c0_236] : memref<3x6x10x8x128xf32, #tpu.memory_space<vmem>>, vector<1x1x1x8x128xf32>
        %325 = vector.shape_cast %324 : vector<1x1x1x8x128xf32> to vector<8x128xf32>
        %326 = arith.mulf %325, %116 : vector<8x128xf32>
        %327 = arith.addf %319, %326 : vector<8x128xf32>
        %c2_i32_237 = arith.constant 2 : i32
        %328 = arith.addi %arg7, %c2_i32_237 : i32
        %c2_i32_238 = arith.constant 2 : i32
        %329 = arith.addi %arg8, %c2_i32_238 : i32
        %c1_239 = arith.constant 1 : index
        %330 = arith.index_cast %328 : i32 to index
        %331 = arith.index_cast %329 : i32 to index
        %c0_240 = arith.constant 0 : index
        %c0_241 = arith.constant 0 : index
        %332 = vector.load %arg6[%c1_239, %330, %331, %c0_240, %c0_241] : memref<3x6x10x8x128xf32, #tpu.memory_space<vmem>>, vector<1x1x1x8x128xf32>
        %333 = vector.shape_cast %332 : vector<1x1x1x8x128xf32> to vector<8x128xf32>
        %334 = arith.mulf %333, %120 : vector<8x128xf32>
        %335 = arith.addf %327, %334 : vector<8x128xf32>
        %c2_i32_242 = arith.constant 2 : i32
        %336 = arith.addi %arg7, %c2_i32_242 : i32
        %c2_i32_243 = arith.constant 2 : i32
        %337 = arith.addi %arg8, %c2_i32_243 : i32
        %c2_244 = arith.constant 2 : index
        %338 = arith.index_cast %336 : i32 to index
        %339 = arith.index_cast %337 : i32 to index
        %c0_245 = arith.constant 0 : index
        %c0_246 = arith.constant 0 : index
        %340 = vector.load %arg6[%c2_244, %338, %339, %c0_245, %c0_246] : memref<3x6x10x8x128xf32, #tpu.memory_space<vmem>>, vector<1x1x1x8x128xf32>
        %341 = vector.shape_cast %340 : vector<1x1x1x8x128xf32> to vector<8x128xf32>
        %342 = arith.mulf %341, %124 : vector<8x128xf32>
        %343 = arith.addf %335, %342 : vector<8x128xf32>
        %344 = arith.addf %128, %201 : vector<8x128xf32>
        %345 = arith.addf %344, %272 : vector<8x128xf32>
        %346 = arith.addf %345, %343 : vector<8x128xf32>
        %c0_247 = arith.constant 0 : index
        %347 = arith.index_cast %arg7 : i32 to index
        %348 = arith.index_cast %arg8 : i32 to index
        %c0_248 = arith.constant 0 : index
        %c0_249 = arith.constant 0 : index
        %349 = vector.load %arg5[%c0_247, %347, %348, %c0_248, %c0_249] : memref<1x4x8x8x128xf32, #tpu.memory_space<vmem>>, vector<1x1x1x8x128xf32>
        %350 = vector.shape_cast %349 : vector<1x1x1x8x128xf32> to vector<8x128xf32>
        %351 = vector.shape_cast %346 : vector<8x128xf32> to vector<1x1x1x8x128xf32>
        tpu.vector_store %arg5[%c0_247, %347, %348, %c0_248, %c0_249], %351 {strides = array<i32>} : memref<1x4x8x8x128xf32, #tpu.memory_space<vmem>>, vector<1x1x1x8x128xf32>,
      }
      %c8_i32_112 = arith.constant 8 : i32
    }
    %c4_i32_109 = arith.constant 4 : i32
    return
  }
  func.func @transform_0(%arg0: i32, %arg1: i32) -> (i32, i32, i32, i32, i32) {
    %c0_i32 = arith.constant 0 : i32
    %c0_i32_0 = arith.constant 0 : i32
    %c0_i32_1 = arith.constant 0 : i32
    %c0_i32_2 = arith.constant 0 : i32
    return %arg0, %c0_i32, %c0_i32_0, %c0_i32_1, %arg1 : i32, i32, i32, i32, i32
  }
  func.func @transform_1(%arg0: i32, %arg1: i32) -> (i32, i32, i32) {
    %c0_i32 = arith.constant 0 : i32
    %c0_i32_0 = arith.constant 0 : i32
    %c0_i32_1 = arith.constant 0 : i32
    return %c0_i32, %c0_i32_0, %arg1 : i32, i32, i32
  }
  func.func @transform_2(%arg0: i32, %arg1: i32) -> (i32, i32) {
    %c0_i32 = arith.constant 0 : i32
    %c0_i32_0 = arith.constant 0 : i32
    return %c0_i32, %arg1 : i32, i32
  }
  func.func @transform_3(%arg0: i32, %arg1: i32) -> (i32, i32, i32, i32, i32) {
    %c0_i32 = arith.constant 0 : i32
    %c0_i32_0 = arith.constant 0 : i32
    %c0_i32_1 = arith.constant 0 : i32
    %c0_i32_2 = arith.constant 0 : i32
    return %arg0, %c0_i32, %c0_i32_0, %c0_i32_1, %arg1 : i32, i32, i32, i32, i32
  }
}

</mosaic_0001>

<bundles_post_ra>
// kernel: tpu_custom_call.1
= control target key start
LH: loop header
LB: loop body
LE: loop exit
PB: predicated region body
PF: predicated region fallthrough
CT: control target
= control target key end

     0   :  { %s2365_s0 = inlined_call_operand.hbm [shape: f32[2,4,8,8,256], index: 0, kind: input, shape index: {}]   ;;  %s2366_s1 = inlined_call_operand.hbm [shape: f32[9,3,256], index: 1, kind: input, shape index: {}]   ;;  %s2367_s2 = inlined_call_operand.hbm [shape: f32[1,256], index: 2, kind: input, shape index: {}]   ;;  %s2368_s3 = inlined_call_operand.hbm [shape: f32[2,4,8,8,256], index: 3, kind: output, shape index: {}]  }
   0x1   :  { %2380 = sst [smem:[#allocation23_spill]] %s2366_s1 }
   0x2   :  { %2381 = sst [smem:[#allocation24_spill]] %s2368_s3 }
   0x3   :  { %8 = vsyncpa [#allocation4], 0 }
   0x4   :  { %10 = vsyncpa [#allocation4 + $0x1], 0 }
   0x5   :  { %11 = vsyncpa [#allocation7], 0 }
   0x6   :  { %13 = vsyncpa [#allocation7 + $0x1], 0 }
   0x7   :  { %14 = vsyncpa [#allocation5], 0 }
   0x8   :  { %16 = vsyncpa [#allocation5 + $0x1], 0  ;;  %s1699_s12 = smov 0   ;;  %s1701_s13 = smov 0  }
   0x9   :  { %s1703_s14 = smov 0   ;;  %s1705_s15 = smov 0  }
   0xa   :  { %s1707_s16 = smov 0   ;;  %s1709_s17 = smov 0  }
   0xb   :  { %s1711_s18 = smov 0   ;;  %s1713_s19 = smov 0  }
   0xc   :  { %s1715_s20 = smov 0   ;;  %s1717_s21 = smov 0  }
   0xd   :  { %s1719_s22 = smov 0  }
   0xe LB: > { %2382 = sst [smem:[#allocation13_spill]] %s1632_s15  ;;  %s1753_s23 = sadd.s32 4294967295, %s1660_s22   ;;  %s1660_s22 = sphi %s1719_s22, %s22_s22   ;;  %s1656_s21 = sphi %s1717_s21, %s2413_s21   ;;  %s1652_s20 = sphi %s1715_s20, %s2421_s20   ;;  %s1648_s19 = sphi %s1713_s19, %s2411_s19   ;;  %s1644_s18 = sphi %s1711_s18, %s2420_s18   ;;  %s1640_s17 = sphi %s1709_s17, %s2419_s17   ;;  %s1636_s16 = sphi %s1707_s16, %s2418_s16   ;;  %s1632_s15 = sphi %s1705_s15, %s2417_s15   ;;  %s1628_s14 = sphi %s1703_s14, %s2416_s14   ;;  %s1624_s13 = sphi %s1701_s13, %s2415_s13   ;;  %s1620_s12 = sphi %s1699_s12, %s2414_s12  }
   0xf   : > { %2383 = sst [smem:[#allocation14_spill]] %s1644_s18  ;;  %s31_s24 = sadd.s32 1, %s1652_s20 }
  0x10   : > { %2384 = sst [smem:[#allocation15_spill]] %s1648_s19  ;;  %p1756_p0 = scmp.ge.s32.totalorder %s31_s24, 2 }
  0x11   : > { %2385 = sst [smem:[#allocation16_spill]] %s1656_s21  ;;  %p51_p1 = scmp.eq.s32.totalorder %s1660_s22, 0 }
  0x12   : > { %p57_p2 = scmp.eq.s32.totalorder %s1753_s23, 0  ;;  %s69_s26 = sadd.s32 1, %s1628_s14 }
  0x13   : > { %s2423_s24 = smov (%p1756_p0, %s31_s24), 0  ;;  %p76_p3 = scmp.ne.s32.totalorder %s1628_s14, %s1624_s13 }
  0x14   : > { %2387 = sst [smem:[#allocation17_spill]] %s2423_s24  ;;  %p82_p4 = scmp.ne.s32.totalorder %s1624_s13, %s1620_s12 }
  0x15   : > { %s1772_s27 = ssub.s32 %s1652_s20, %s2423_s24  ;;  %p78_p6 = por %p76_p3, %p51_p1 }
  0x16   : > { %p67_p5 = scmp.eq.s32.totalorder %s1772_s27, 0  ;;  %p1779_p7 = por %p82_p4, %p57_p2 }
  0x17   : > { %p1293_p8 = scmp.lt.s32.totalorder %s1660_s22, 4  ;;  %s183_s30 = sand.u32 1, %s1660_s22  }
  0x18   : > { %s2388_s28 = scalar_select %p1779_p7, 1, 0 }
  0x19   : > { %s1785_s29 = scalar_select %p67_p5, %s1628_s14, %s69_s26  }
  0x1a   : > { %2389 = sst [smem:[#allocation18_spill]] %s2388_s28  ;;  %s2369_s4 = sand.u32 1, %s1628_s14  }
  0x1b   : > { %2390 = sst [smem:[#allocation19_spill]] %s1785_s29  ;;  %s1269_s5 = smul.u32 36, %s2369_s4 }
  0x1c   : > { %s1182_s6 = sshll.u32 %s1652_s20, 2  ;;  %s2391_s1 = sld [smem:[#allocation23_spill]] }
  0x1d   : > { %p1797_p9 = pnand %p1293_p8, %p78_p6  ;;  %s187_s12 = scalar_lea.vmem [#allocation6], %s1269_s5 }
  0x1e   : > { %s194_s26 = sshll.u32 %s187_s12, 4  ;;  %s2370_s7 = smov 128   ;;  %s195_s26 = int_to_ptr.vmem [resolvable:$true] %s194_s26 }
  0x1f   : > { %s1671_s8 = smov 64   ;;  %s1672_s4 = smov 4  }
  0x20   : > { %p1183_p10 = scmp.ge.s32.totalorder %s1660_s22, 1  ;;  %p219_p11 = scmp.lt.s32.totalorder %s1660_s22, 5 }
  0x21   : > { %s43_s12 = sadd.s32 1, %s1640_s17  ;;  %p50_p13 = scmp.ne.s32.totalorder %s1640_s17, %s1636_s16 }
  0x22   : > { %s191_s9 = scalar_lea.hbm %s2391_s1, %s1182_s6  ;;  %s1801_s6 = scalar_lea.sflag [#allocation7], %s183_s30 }
  0x23   : > { %s192_s11 = sshll.u32 %s191_s9, 4  ;;  %p1809_p12 = pnand %p1183_p10, %p219_p11  ;;  %s193_s11 = int_to_ptr.hbm [resolvable:$true] %s192_s11 }
  0x24   : > { %1285 = dma.hbm_to_vmem [thread:$0]  (!%p1797_p9), %s193_s11, 576, %s195_s26, %s1801_s6, %s2370_s7, %s1671_s8, %s1672_s4  }
  0x25   : > { %s1176_s30 = sadd.s32 4294967294, %s1660_s22   ;;  %s34_s9 = sadd.s32 1, %s1656_s21 }
  0x26   : > { %s2425_s9 = smov (!%p1756_p0, %s34_s9), %s1656_s21  ;;  %p56_p3 = scmp.ne.s32.totalorder %s1636_s16, %s1632_s15 }
  0x27   : > { %p36_p4 = scmp.ge.s32.totalorder %s2425_s9, 2  ;;  %p134_p5 = scmp.eq.s32.totalorder %s1753_s23, 3 }
  0x28   : > { %p1826_p6 = por %p51_p1, %p50_p13  ;;  %p1832_p10 = por %p57_p2, %p56_p3 }
  0x29   : > { %s2427_s9 = smov (%p36_p4, %s2425_s9), 0  ;;  %p1838_p0 = por %p134_p5, %p50_p13 }
  0x2a   : > { %2396 = sst [smem:[#allocation20_spill]] %s2427_s9  ;;  %p140_p11 = scmp.eq.s32.totalorder %s1176_s30, 3 }
  0x2b   : > { %s2397_s25 = scalar_select %p1838_p0, 1, 0 }
  0x2c   : > { %s38_s26 = ssub.s32 %s1656_s21, %s2427_s9  ;;  %s160_s8 = sand.u32 1, %s1640_s17  }
  0x2d   : > { %2398 = sst [smem:[#allocation21_spill]] %s2397_s25  ;;  %s40_s7 = sor.u32 %s1772_s27, %s38_s26 }
  0x2e   : > { %p1846_p1 = por %p140_p11, %p56_p3  ;;  %p41_p2 = scmp.eq.s32.totalorder %s40_s7, 0 }
  0x2f   : > { %s1179_s24 = sshll.u32 %s160_s8, 8  ;;  %s1180_s29 = sshll.u32 %s1656_s21, 6 }
  0x30   : > { %s1852_s15 = scalar_select %p41_p2, %s1640_s17, %s43_s12  }
  0x31   : > { %s168_s3 = sadd.s32 %s1652_s20, %s1180_s29  ;;  %s164_s25 = scalar_lea.vmem [#allocation3], %s1179_s24 }
  0x32   : > { %2400 = sst [smem:[#allocation22_spill]] %s1852_s15  ;;  %s1181_s18 = sshll.u32 %s168_s3, 3 }
  0x33   : > { %s173_s30 = sshll.u32 %s164_s25, 4  ;;  %s170_s27 = scalar_lea.hbm %s2365_s0, %s1181_s18  ;;  %s174_s30 = int_to_ptr.vmem [resolvable:$true] %s173_s30 }
  0x34   : > { %s171_s26 = sshll.u32 %s170_s27, 4  ;;  %p1280_p13 = pnand %p1293_p8, %p1826_p6  ;;  %s172_s26 = int_to_ptr.hbm [resolvable:$true] %s171_s26 }
  0x35   : > { %s161_s7 = scalar_lea.sflag [#allocation4], %s160_s8  ;;  %s1673_s12 = smov 256  }
  0x36   : > { %s1674_s9 = smov 8   ;;  %s2401_s21 = smov 128  }
  0x37   : > { %1282 = dma.hbm_to_vmem [thread:$0]  (!%p1280_p13), %s172_s26, 4096, %s174_s30, %s161_s7, %s1673_s12, %s2401_s21, %s1674_s9  }
  0x38   : > { %s210_s29 = scalar_lea.hbm %s2367_s2, %s1652_s20  ;;  %s2402_s19 = sand.u32 1, %s1628_s14  }
  0x39   : > { %s212_s25 = sshll.u32 %s210_s29, 4  ;;  %s207_s28 = scalar_lea.vmem [#allocation8], %s2402_s19  ;;  %s213_s25 = int_to_ptr.hbm [resolvable:$true] %s212_s25 }
  0x3a   : > { %s214_s15 = sshll.u32 %s207_s28, 4  ;;  %223 = sbr.rel (%p1809_p12) target bundleno = 376 (0x178), region = 32  ;;  %s215_s15 = int_to_ptr.vmem [resolvable:$true] %s214_s15 }
  0x3b   : > { %1288 = dma.hbm_to_vmem [thread:$0]  (!%p1797_p9), %s213_s25, 16, %s215_s15, %s1801_s6  }
  0x3c   : > { %s1875_s18 = sand.u32 (!%p1809_p12), 1, %s1636_s16  }
  0x3d   : > { %s1184_s21 = sshll.u32 (!%p1809_p12), %s1875_s18, 8  ;;  %s226_s9 = scalar_lea.sflag (!%p1809_p12), [#allocation4], %s1875_s18 }
  0x3e   : > { %s1881_s4 = scalar_lea.vmem (!%p1809_p12), [#allocation3], %s1184_s21 }
  0x3f   : > { %1607 = dma.done.wait (%p1832_p10), %s226_s9, 4096  }
  0x40   : > { %1609 = vsyncadd (%p1832_p10), %s226_s9, 4294963200  ;;  %s235_s10 = sand.u32 1, %s1753_s23   ;;  %s237_s6 = sand.u32 1, %s1624_s13  }
  0x41   : > { %s1270_s5 = smul.u32 36, %s237_s6  ;;  %s236_s8 = scalar_lea.sflag [#allocation7], %s235_s10 }
  0x43   : > { %s1891_s30 = scalar_lea.vmem [#allocation6], %s1270_s5 }
  0x44   : > { %1611 = dma.done.wait (%p1779_p7), %s236_s8, 592  }
  0x45   : > { %1613 = vsyncadd (%p1779_p7), %s236_s8, 4294966704  ;;  %v1675_v0 = vmov 0.0   ;;  %v1904_v1 = vld [vmem:[%s1891_s30] ss:$0 sm:$0xff]  ;;  %v1907_v2 = vld [vmem:[%s1891_s30 + $0x1] ss:$0 sm:$0xff] }
  0x46   : > { %292 = vst [vmem:[#allocation2 + $0x58] sm:$0xff] %v1675_v0  ;;  %v1910_v3 = vld [vmem:[%s1891_s30 + $0x2] ss:$0 sm:$0xff]  ;;  %v1913_v4 = vld [vmem:[%s1891_s30 + $0x4] ss:$0 sm:$0xff]  ;;  %s248_s23 = scalar_lea.vmem [#allocation8], %s237_s6 }
  0x47   : > { %281 = vst [vmem:[#allocation2] sm:$0xff] %v1675_v0  ;;  %v1916_v5 = vld [vmem:[%s1891_s30 + $0x5] ss:$0 sm:$0xff]  ;;  %v1919_v6 = vld [vmem:[%s1891_s30 + $0x6] ss:$0 sm:$0xff]  ;;  %v463_v31 = vld [vmem:[%s1881_s4 + $0x10] sm:$0xff] }
  0x48   : > { %282 = vst [vmem:[#allocation2 + $0x8] sm:$0xff] %v1675_v0  ;;  %v1922_v7 = vld [vmem:[%s1891_s30 + $0x8] ss:$0 sm:$0xff]  ;;  %v1925_v8 = vld [vmem:[%s1891_s30 + $0x9] ss:$0 sm:$0xff]  ;;  %v461_v29 = vld [vmem:[%s1881_s4] sm:$0xff] }
  0x49   : > { %283 = vst [vmem:[#allocation2 + $0x10] sm:$0xff] %v1675_v0  ;;  %v1928_v9 = vld [vmem:[%s1891_s30 + $0xa] ss:$0 sm:$0xff]  ;;  %v1931_v10 = vld [vmem:[%s1891_s30 + $0xc] ss:$0 sm:$0xff]  ;;  %v464_v32 = vld [vmem:[%s1881_s4 + $0x18] sm:$0xff] }
  0x4a   : > { %284 = vst [vmem:[#allocation2 + $0x18] sm:$0xff] %v1675_v0  ;;  %v1934_v11 = vld [vmem:[%s1891_s30 + $0xd] ss:$0 sm:$0xff]  ;;  %v1937_v12 = vld [vmem:[%s1891_s30 + $0xe] ss:$0 sm:$0xff]  ;;  %v465_v33 = vld [vmem:[%s1881_s4 + $0x20] sm:$0xff] }
  0x4b   : > { %285 = vst [vmem:[#allocation2 + $0x20] sm:$0xff] %v1675_v0  ;;  %v1940_v13 = vld [vmem:[%s1891_s30 + $0x10] ss:$0 sm:$0xff]  ;;  %v1943_v14 = vld [vmem:[%s1891_s30 + $0x11] ss:$0 sm:$0xff]  ;;  %v462_v30 = vld [vmem:[%s1881_s4 + $0x8] sm:$0xff] }
  0x4c   : > { %v1946_v15 = vld [vmem:[%s1891_s30 + $0x12] ss:$0 sm:$0xff]  ;;  %v1949_v16 = vld [vmem:[%s1891_s30 + $0x14] ss:$0 sm:$0xff]  ;;  %v1952_v17 = vld [vmem:[%s1891_s30 + $0x15] ss:$0 sm:$0xff] }
  0x4d   : > { %v1955_v18 = vld [vmem:[%s1891_s30 + $0x16] ss:$0 sm:$0xff]  ;;  %v1958_v19 = vld [vmem:[%s1891_s30 + $0x18] ss:$0 sm:$0xff]  ;;  %v1961_v20 = vld [vmem:[%s1891_s30 + $0x19] ss:$0 sm:$0xff] }
  0x4e   : > { %v1964_v21 = vld [vmem:[%s1891_s30 + $0x1a] ss:$0 sm:$0xff]  ;;  %v1967_v22 = vld [vmem:[%s1891_s30 + $0x1c] ss:$0 sm:$0xff]  ;;  %v1970_v23 = vld [vmem:[%s1891_s30 + $0x1d] ss:$0 sm:$0xff] }
  0x4f   : > { %v1973_v24 = vld [vmem:[%s1891_s30 + $0x1e] ss:$0 sm:$0xff]  ;;  %v1976_v25 = vld [vmem:[%s1891_s30 + $0x20] ss:$0 sm:$0xff]  ;;  %v1979_v26 = vld [vmem:[%s1891_s30 + $0x21] ss:$0 sm:$0xff] }
  0x50   : > { %v1982_v27 = vld [vmem:[%s1891_s30 + $0x22] ss:$0 sm:$0xff]  ;;  %v1986_v28 = vld [vmem:[%s248_s23] ss:$0 sm:$0xff]  ;;  %286 = vst [vmem:[#allocation2 + $0x28] sm:$0xff] %v1675_v0  ;;  %v466_v34 = vld [vmem:[%s1881_s4 + $0x28] sm:$0xff] }
  0x51   : > { %287 = vst [vmem:[#allocation2 + $0x30] sm:$0xff] %v1675_v0  ;;  %v467_v35 = vld [vmem:[%s1881_s4 + $0x30] sm:$0xff]  ;;  %v468_v36 = vld [vmem:[%s1881_s4 + $0x38] sm:$0xff]  ;;  %v469_v37 = vld [vmem:[%s1881_s4 + $0x40] sm:$0xff]  ;;  %s2228_s11 = scalar_lea.vmem [#allocation9], %s1184_s21  ;;  %s2230_s27 = smov 0  }
  0x52   : > { %288 = vst [vmem:[#allocation2 + $0x38] sm:$0xff] %v1675_v0  ;;  %v470_v38 = vld [vmem:[%s1881_s4 + $0x48] sm:$0xff]  ;;  %v471_v39 = vld [vmem:[%s1881_s4 + $0x50] sm:$0xff]  ;;  %v472_v40 = vld [vmem:[%s1881_s4 + $0x58] sm:$0xff] }
  0x53   : > { %289 = vst [vmem:[#allocation2 + $0x40] sm:$0xff] %v1675_v0  ;;  %v473_v41 = vld [vmem:[%s1881_s4 + $0x60] sm:$0xff]  ;;  %v474_v42 = vld [vmem:[%s1881_s4 + $0x68] sm:$0xff]  ;;  %v475_v43 = vld [vmem:[%s1881_s4 + $0x70] sm:$0xff] }
  0x54   : > { %290 = vst [vmem:[#allocation2 + $0x48] sm:$0xff] %v1675_v0  ;;  %v476_v44 = vld [vmem:[%s1881_s4 + $0x78] sm:$0xff]  ;;  %v477_v45 = vld [vmem:[%s1881_s4 + $0x80] sm:$0xff]  ;;  %v478_v46 = vld [vmem:[%s1881_s4 + $0x88] sm:$0xff] }
  0x55   : > { %291 = vst [vmem:[#allocation2 + $0x50] sm:$0xff] %v1675_v0  ;;  %v479_v47 = vld [vmem:[%s1881_s4 + $0x90] sm:$0xff]  ;;  %v480_v48 = vld [vmem:[%s1881_s4 + $0x98] sm:$0xff]  ;;  %v481_v49 = vld [vmem:[%s1881_s4 + $0xa0] sm:$0xff] }
  0x56   : > { %293 = vst [vmem:[#allocation2 + $0x60] sm:$0xff] %v1675_v0  ;;  %v482_v50 = vld [vmem:[%s1881_s4 + $0xa8] sm:$0xff]  ;;  %v483_v51 = vld [vmem:[%s1881_s4 + $0xb0] sm:$0xff]  ;;  %v484_v52 = vld [vmem:[%s1881_s4 + $0xb8] sm:$0xff] }
  0x57   : > { %294 = vst [vmem:[#allocation2 + $0x68] sm:$0xff] %v1675_v0  ;;  %v485_v53 = vld [vmem:[%s1881_s4 + $0xc0] sm:$0xff]  ;;  %v486_v54 = vld [vmem:[%s1881_s4 + $0xc8] sm:$0xff]  ;;  %v487_v55 = vld [vmem:[%s1881_s4 + $0xd0] sm:$0xff] }
  0x58   : > { %295 = vst [vmem:[#allocation2 + $0x70] sm:$0xff] %v1675_v0  ;;  %v488_v56 = vld [vmem:[%s1881_s4 + $0xd8] sm:$0xff]  ;;  %v489_v57 = vld [vmem:[%s1881_s4 + $0xe0] sm:$0xff]  ;;  %v490_v58 = vld [vmem:[%s1881_s4 + $0xe8] sm:$0xff] }
  0x59   : > { %296 = vst [vmem:[#allocation2 + $0x78] sm:$0xff] %v1675_v0  ;;  %v491_v59 = vld [vmem:[%s1881_s4 + $0xf0] sm:$0xff]  ;;  %v492_v60 = vld [vmem:[%s1881_s4 + $0xf8] sm:$0xff]  ;;  %v526_v61 = vld [vmem:[%s1881_s4] sm:$0x7f] }
  0x5a   : > { %297 = vst [vmem:[#allocation2 + $0x80] sm:$0xff] %v1675_v0  ;;  %v527_v62 = vld [vmem:[%s1881_s4 + $0x8] sm:$0x7f]  ;;  %v528_v63 = vld [vmem:[%s1881_s4 + $0x10] sm:$0x7f] }
  0x5b   : > { %298 = vst [vmem:[#allocation2 + $0x88] sm:$0xff] %v1675_v0 }
  0x5c   : > { %299 = vst [vmem:[#allocation2 + $0x90] sm:$0xff] %v1675_v0 }
  0x5d   : > { %300 = vst [vmem:[#allocation2 + $0x98] sm:$0xff] %v1675_v0 }
  0x5e   : > { %301 = vst [vmem:[#allocation2 + $0xa0] sm:$0xff] %v1675_v0 }
  0x5f   : > { %302 = vst [vmem:[#allocation2 + $0xa8] sm:$0xff] %v1675_v0 }
  0x60   : > { %303 = vst [vmem:[#allocation2 + $0xb0] sm:$0xff] %v1675_v0 }
  0x61   : > { %304 = vst [vmem:[#allocation2 + $0xb8] sm:$0xff] %v1675_v0 }
  0x62   : > { %305 = vst [vmem:[#allocation2 + $0xc0] sm:$0xff] %v1675_v0 }
  0x63   : > { %306 = vst [vmem:[#allocation2 + $0xc8] sm:$0xff] %v1675_v0 }
  0x64   : > { %307 = vst [vmem:[#allocation2 + $0xd0] sm:$0xff] %v1675_v0 }
  0x65   : > { %308 = vst [vmem:[#allocation2 + $0xd8] sm:$0xff] %v1675_v0 }
  0x66   : > { %309 = vst [vmem:[#allocation2 + $0xe0] sm:$0xff] %v1675_v0 }
  0x67   : > { %310 = vst [vmem:[#allocation2 + $0xe8] sm:$0xff] %v1675_v0 }
  0x68   : > { %311 = vst [vmem:[#allocation2 + $0xf0] sm:$0xff] %v1675_v0 }
  0x69   : > { %312 = vst [vmem:[#allocation2 + $0xf8] sm:$0xff] %v1675_v0 }
  0x6a   : > { %313 = vst [vmem:[#allocation2 + $0x100] sm:$0xff] %v1675_v0 }
  0x6b   : > { %314 = vst [vmem:[#allocation2 + $0x108] sm:$0xff] %v1675_v0 }
  0x6c   : > { %315 = vst [vmem:[#allocation2 + $0x110] sm:$0xff] %v1675_v0 }
  0x6d   : > { %316 = vst [vmem:[#allocation2 + $0x118] sm:$0xff] %v1675_v0 }
  0x6e   : > { %317 = vst [vmem:[#allocation2 + $0x120] sm:$0xff] %v1675_v0 }
  0x6f   : > { %318 = vst [vmem:[#allocation2 + $0x128] sm:$0xff] %v1675_v0 }
  0x70   : > { %319 = vst [vmem:[#allocation2 + $0x130] sm:$0xff] %v1675_v0 }
  0x71   : > { %320 = vst [vmem:[#allocation2 + $0x138] sm:$0xff] %v1675_v0 }
  0x72   : > { %321 = vst [vmem:[#allocation2 + $0x140] sm:$0xff] %v1675_v0 }
  0x73   : > { %322 = vst [vmem:[#allocation2 + $0x148] sm:$0xff] %v1675_v0 }
  0x74   : > { %323 = vst [vmem:[#allocation2 + $0x150] sm:$0xff] %v1675_v0 }
  0x75   : > { %324 = vst [vmem:[#allocation2 + $0x158] sm:$0xff] %v1675_v0 }
  0x76   : > { %325 = vst [vmem:[#allocation2 + $0x160] sm:$0xff] %v1675_v0 }
  0x77   : > { %326 = vst [vmem:[#allocation2 + $0x168] sm:$0xff] %v1675_v0 }
  0x78   : > { %327 = vst [vmem:[#allocation2 + $0x170] sm:$0xff] %v1675_v0 }
  0x79   : > { %328 = vst [vmem:[#allocation2 + $0x178] sm:$0xff] %v1675_v0 }
  0x7a   : > { %329 = vst [vmem:[#allocation2 + $0x180] sm:$0xff] %v1675_v0 }
  0x7b   : > { %330 = vst [vmem:[#allocation2 + $0x188] sm:$0xff] %v1675_v0 }
  0x7c   : > { %331 = vst [vmem:[#allocation2 + $0x190] sm:$0xff] %v1675_v0 }
  0x7d   : > { %332 = vst [vmem:[#allocation2 + $0x198] sm:$0xff] %v1675_v0 }
  0x7e   : > { %333 = vst [vmem:[#allocation2 + $0x1a0] sm:$0xff] %v1675_v0 }
  0x7f   : > { %334 = vst [vmem:[#allocation2 + $0x1a8] sm:$0xff] %v1675_v0 }
  0x80   : > { %335 = vst [vmem:[#allocation2 + $0x1b0] sm:$0xff] %v1675_v0 }
  0x81   : > { %336 = vst [vmem:[#allocation2 + $0x1b8] sm:$0xff] %v1675_v0 }
  0x82   : > { %337 = vst [vmem:[#allocation2 + $0x1c0] sm:$0xff] %v1675_v0 }
  0x83   : > { %338 = vst [vmem:[#allocation2 + $0x1c8] sm:$0xff] %v1675_v0 }
  0x84   : > { %339 = vst [vmem:[#allocation2 + $0x1d0] sm:$0xff] %v1675_v0 }
  0x85   : > { %340 = vst [vmem:[#allocation2 + $0x1d8] sm:$0xff] %v1675_v0 }
  0x86   : > { %341 = vst [vmem:[#allocation2 + $0x1e0] sm:$0xff] %v1675_v0 }
  0x87   : > { %342 = vst [vmem:[#allocation2 + $0x1e8] sm:$0xff] %v1675_v0 }
  0x88   : > { %343 = vst [vmem:[#allocation2 + $0x1f0] sm:$0xff] %v1675_v0 }
  0x89   : > { %344 = vst [vmem:[#allocation2 + $0x1f8] sm:$0xff] %v1675_v0 }
  0x8a   : > { %345 = vst [vmem:[#allocation2 + $0x200] sm:$0xff] %v1675_v0 }
  0x8b   : > { %346 = vst [vmem:[#allocation2 + $0x208] sm:$0xff] %v1675_v0 }
  0x8c   : > { %347 = vst [vmem:[#allocation2 + $0x210] sm:$0xff] %v1675_v0 }
  0x8d   : > { %348 = vst [vmem:[#allocation2 + $0x218] sm:$0xff] %v1675_v0 }
  0x8e   : > { %349 = vst [vmem:[#allocation2 + $0x220] sm:$0xff] %v1675_v0 }
  0x8f   : > { %350 = vst [vmem:[#allocation2 + $0x228] sm:$0xff] %v1675_v0 }
  0x90   : > { %351 = vst [vmem:[#allocation2 + $0x230] sm:$0xff] %v1675_v0 }
  0x91   : > { %360 = vst [vmem:[#allocation2 + $0x278] sm:$0xff] %v1675_v0 }
  0x92   : > { %361 = vst [vmem:[#allocation2 + $0x280] sm:$0xff] %v1675_v0 }
  0x93   : > { %370 = vst [vmem:[#allocation2 + $0x2c8] sm:$0xff] %v1675_v0 }
  0x94   : > { %371 = vst [vmem:[#allocation2 + $0x2d0] sm:$0xff] %v1675_v0 }
  0x95   : > { %380 = vst [vmem:[#allocation2 + $0x318] sm:$0xff] %v1675_v0 }
  0x96   : > { %381 = vst [vmem:[#allocation2 + $0x320] sm:$0xff] %v1675_v0 }
  0x97   : > { %390 = vst [vmem:[#allocation2 + $0x368] sm:$0xff] %v1675_v0 }
  0x98   : > { %391 = vst [vmem:[#allocation2 + $0x370] sm:$0xff] %v1675_v0 }
  0x99   : > { %392 = vst [vmem:[#allocation2 + $0x378] sm:$0xff] %v1675_v0 }
  0x9a   : > { %393 = vst [vmem:[#allocation2 + $0x380] sm:$0xff] %v1675_v0 }
  0x9b   : > { %394 = vst [vmem:[#allocation2 + $0x388] sm:$0xff] %v1675_v0 }
  0x9c   : > { %395 = vst [vmem:[#allocation2 + $0x390] sm:$0xff] %v1675_v0 }
  0x9d   : > { %396 = vst [vmem:[#allocation2 + $0x398] sm:$0xff] %v1675_v0 }
  0x9e   : > { %397 = vst [vmem:[#allocation2 + $0x3a0] sm:$0xff] %v1675_v0 }
  0x9f   : > { %398 = vst [vmem:[#allocation2 + $0x3a8] sm:$0xff] %v1675_v0 }
  0xa0   : > { %399 = vst [vmem:[#allocation2 + $0x3b0] sm:$0xff] %v1675_v0 }
  0xa1   : > { %400 = vst [vmem:[#allocation2 + $0x3b8] sm:$0xff] %v1675_v0 }
  0xa2   : > { %401 = vst [vmem:[#allocation2 + $0x3c0] sm:$0xff] %v1675_v0 }
  0xa3   : > { %402 = vst [vmem:[#allocation2 + $0x3c8] sm:$0xff] %v1675_v0 }
  0xa4   : > { %403 = vst [vmem:[#allocation2 + $0x3d0] sm:$0xff] %v1675_v0 }
  0xa5   : > { %404 = vst [vmem:[#allocation2 + $0x3d8] sm:$0xff] %v1675_v0 }
  0xa6   : > { %405 = vst [vmem:[#allocation2 + $0x3e0] sm:$0xff] %v1675_v0 }
  0xa7   : > { %406 = vst [vmem:[#allocation2 + $0x3e8] sm:$0xff] %v1675_v0 }
  0xa8   : > { %407 = vst [vmem:[#allocation2 + $0x3f0] sm:$0xff] %v1675_v0 }
  0xa9   : > { %408 = vst [vmem:[#allocation2 + $0x3f8] sm:$0xff] %v1675_v0 }
  0xaa   : > { %409 = vst [vmem:[#allocation2 + $0x400] sm:$0xff] %v1675_v0 }
  0xab   : > { %410 = vst [vmem:[#allocation2 + $0x408] sm:$0xff] %v1675_v0 }
  0xac   : > { %411 = vst [vmem:[#allocation2 + $0x410] sm:$0xff] %v1675_v0 }
  0xad   : > { %412 = vst [vmem:[#allocation2 + $0x418] sm:$0xff] %v1675_v0 }
  0xae   : > { %413 = vst [vmem:[#allocation2 + $0x420] sm:$0xff] %v1675_v0 }
  0xaf   : > { %414 = vst [vmem:[#allocation2 + $0x428] sm:$0xff] %v1675_v0 }
  0xb0   : > { %415 = vst [vmem:[#allocation2 + $0x430] sm:$0xff] %v1675_v0 }
  0xb1   : > { %416 = vst [vmem:[#allocation2 + $0x438] sm:$0xff] %v1675_v0 }
  0xb2   : > { %417 = vst [vmem:[#allocation2 + $0x440] sm:$0xff] %v1675_v0 }
  0xb3   : > { %418 = vst [vmem:[#allocation2 + $0x448] sm:$0xff] %v1675_v0 }
  0xb4   : > { %419 = vst [vmem:[#allocation2 + $0x450] sm:$0xff] %v1675_v0 }
  0xb5   : > { %420 = vst [vmem:[#allocation2 + $0x458] sm:$0xff] %v1675_v0 }
  0xb6   : > { %421 = vst [vmem:[#allocation2 + $0x460] sm:$0xff] %v1675_v0 }
  0xb7   : > { %422 = vst [vmem:[#allocation2 + $0x468] sm:$0xff] %v1675_v0 }
  0xb8   : > { %423 = vst [vmem:[#allocation2 + $0x470] sm:$0xff] %v1675_v0 }
  0xb9   : > { %424 = vst [vmem:[#allocation2 + $0x478] sm:$0xff] %v1675_v0 }
  0xba   : > { %425 = vst [vmem:[#allocation2 + $0x480] sm:$0xff] %v1675_v0 }
  0xbb   : > { %426 = vst [vmem:[#allocation2 + $0x488] sm:$0xff] %v1675_v0 }
  0xbc   : > { %427 = vst [vmem:[#allocation2 + $0x490] sm:$0xff] %v1675_v0 }
  0xbd   : > { %428 = vst [vmem:[#allocation2 + $0x498] sm:$0xff] %v1675_v0 }
  0xbe   : > { %429 = vst [vmem:[#allocation2 + $0x4a0] sm:$0xff] %v1675_v0 }
  0xbf   : > { %430 = vst [vmem:[#allocation2 + $0x4a8] sm:$0xff] %v1675_v0 }
  0xc0   : > { %431 = vst [vmem:[#allocation2 + $0x4b0] sm:$0xff] %v1675_v0 }
  0xc1   : > { %432 = vst [vmem:[#allocation2 + $0x4b8] sm:$0xff] %v1675_v0 }
  0xc2   : > { %433 = vst [vmem:[#allocation2 + $0x4c0] sm:$0xff] %v1675_v0 }
  0xc3   : > { %434 = vst [vmem:[#allocation2 + $0x4c8] sm:$0xff] %v1675_v0 }
  0xc4   : > { %435 = vst [vmem:[#allocation2 + $0x4d0] sm:$0xff] %v1675_v0 }
  0xc5   : > { %436 = vst [vmem:[#allocation2 + $0x4d8] sm:$0xff] %v1675_v0 }
  0xc6   : > { %437 = vst [vmem:[#allocation2 + $0x4e0] sm:$0xff] %v1675_v0 }
  0xc7   : > { %438 = vst [vmem:[#allocation2 + $0x4e8] sm:$0xff] %v1675_v0 }
  0xc8   : > { %439 = vst [vmem:[#allocation2 + $0x4f0] sm:$0xff] %v1675_v0 }
  0xc9   : > { %440 = vst [vmem:[#allocation2 + $0x4f8] sm:$0xff] %v1675_v0 }
  0xca   : > { %441 = vst [vmem:[#allocation2 + $0x500] sm:$0xff] %v1675_v0 }
  0xcb   : > { %442 = vst [vmem:[#allocation2 + $0x508] sm:$0xff] %v1675_v0 }
  0xcc   : > { %443 = vst [vmem:[#allocation2 + $0x510] sm:$0xff] %v1675_v0 }
  0xcd   : > { %444 = vst [vmem:[#allocation2 + $0x518] sm:$0xff] %v1675_v0 }
  0xce   : > { %445 = vst [vmem:[#allocation2 + $0x520] sm:$0xff] %v1675_v0 }
  0xcf   : > { %446 = vst [vmem:[#allocation2 + $0x528] sm:$0xff] %v1675_v0 }
  0xd0   : > { %447 = vst [vmem:[#allocation2 + $0x530] sm:$0xff] %v1675_v0 }
  0xd1   : > { %448 = vst [vmem:[#allocation2 + $0x538] sm:$0xff] %v1675_v0 }
  0xd2   : > { %449 = vst [vmem:[#allocation2 + $0x540] sm:$0xff] %v1675_v0 }
  0xd3   : > { %450 = vst [vmem:[#allocation2 + $0x548] sm:$0xff] %v1675_v0 }
  0xd4   : > { %451 = vst [vmem:[#allocation2 + $0x550] sm:$0xff] %v1675_v0 }
  0xd5   : > { %452 = vst [vmem:[#allocation2 + $0x558] sm:$0xff] %v1675_v0 }
  0xd6   : > { %453 = vst [vmem:[#allocation2 + $0x560] sm:$0xff] %v1675_v0 }
  0xd7   : > { %454 = vst [vmem:[#allocation2 + $0x568] sm:$0xff] %v1675_v0 }
  0xd8   : > { %455 = vst [vmem:[#allocation2 + $0x570] sm:$0xff] %v1675_v0 }
  0xd9   : > { %456 = vst [vmem:[#allocation2 + $0x578] sm:$0xff] %v1675_v0 }
  0xda   : > { %457 = vst [vmem:[#allocation2 + $0x580] sm:$0xff] %v1675_v0 }
  0xdb   : > { %458 = vst [vmem:[#allocation2 + $0x588] sm:$0xff] %v1675_v0 }
  0xdc   : > { %459 = vst [vmem:[#allocation2 + $0x590] sm:$0xff] %v1675_v0 }
  0xdd   : > { %460 = vst [vmem:[#allocation2 + $0x598] sm:$0xff] %v1675_v0  ;;  %v529_v0 = vld [vmem:[%s1881_s4 + $0x18] sm:$0x7f] }
  0xde   : > { %494 = vst [vmem:[#allocation2 + $0x238] sm:$0xff] %v461_v29  ;;  %v530_v29 = vld [vmem:[%s1881_s4 + $0x20] sm:$0x7f] }
  0xdf   : > { %495 = vst [vmem:[#allocation2 + $0x240] sm:$0xff] %v462_v30  ;;  %v531_v30 = vld [vmem:[%s1881_s4 + $0x28] sm:$0x7f] }
  0xe0   : > { %496 = vst [vmem:[#allocation2 + $0x248] sm:$0xff] %v463_v31  ;;  %v532_v31 = vld [vmem:[%s1881_s4 + $0x30] sm:$0x7f] }
  0xe1   : > { %497 = vst [vmem:[#allocation2 + $0x250] sm:$0xff] %v464_v32  ;;  %v533_v32 = vld [vmem:[%s1881_s4 + $0x38] sm:$0x7f] }
  0xe2   : > { %498 = vst [vmem:[#allocation2 + $0x258] sm:$0xff] %v465_v33  ;;  %v534_v33 = vld [vmem:[%s1881_s4 + $0x40] sm:$0x7f] }
  0xe3   : > { %499 = vst [vmem:[#allocation2 + $0x260] sm:$0xff] %v466_v34  ;;  %v535_v34 = vld [vmem:[%s1881_s4 + $0x48] sm:$0x7f] }
  0xe4   : > { %500 = vst [vmem:[#allocation2 + $0x268] sm:$0xff] %v467_v35  ;;  %v536_v35 = vld [vmem:[%s1881_s4 + $0x50] sm:$0x7f] }
  0xe5   : > { %501 = vst [vmem:[#allocation2 + $0x270] sm:$0xff] %v468_v36  ;;  %v537_v36 = vld [vmem:[%s1881_s4 + $0x58] sm:$0x7f] }
  0xe6   : > { %502 = vst [vmem:[#allocation2 + $0x288] sm:$0xff] %v469_v37  ;;  %v538_v37 = vld [vmem:[%s1881_s4 + $0x60] sm:$0x7f] }
  0xe7   : > { %503 = vst [vmem:[#allocation2 + $0x290] sm:$0xff] %v470_v38  ;;  %v539_v38 = vld [vmem:[%s1881_s4 + $0x68] sm:$0x7f] }
  0xe8   : > { %504 = vst [vmem:[#allocation2 + $0x298] sm:$0xff] %v471_v39  ;;  %v540_v39 = vld [vmem:[%s1881_s4 + $0x70] sm:$0x7f] }
  0xe9   : > { %505 = vst [vmem:[#allocation2 + $0x2a0] sm:$0xff] %v472_v40  ;;  %v541_v40 = vld [vmem:[%s1881_s4 + $0x78] sm:$0x7f] }
  0xea   : > { %506 = vst [vmem:[#allocation2 + $0x2a8] sm:$0xff] %v473_v41  ;;  %v542_v41 = vld [vmem:[%s1881_s4 + $0x80] sm:$0x7f] }
  0xeb   : > { %507 = vst [vmem:[#allocation2 + $0x2b0] sm:$0xff] %v474_v42  ;;  %v543_v42 = vld [vmem:[%s1881_s4 + $0x88] sm:$0x7f] }
  0xec   : > { %508 = vst [vmem:[#allocation2 + $0x2b8] sm:$0xff] %v475_v43  ;;  %v544_v43 = vld [vmem:[%s1881_s4 + $0x90] sm:$0x7f] }
  0xed   : > { %509 = vst [vmem:[#allocation2 + $0x2c0] sm:$0xff] %v476_v44  ;;  %v545_v44 = vld [vmem:[%s1881_s4 + $0x98] sm:$0x7f] }
  0xee   : > { %510 = vst [vmem:[#allocation2 + $0x2d8] sm:$0xff] %v477_v45  ;;  %v546_v45 = vld [vmem:[%s1881_s4 + $0xa0] sm:$0x7f] }
  0xef   : > { %511 = vst [vmem:[#allocation2 + $0x2e0] sm:$0xff] %v478_v46  ;;  %v547_v46 = vld [vmem:[%s1881_s4 + $0xa8] sm:$0x7f] }
  0xf0   : > { %512 = vst [vmem:[#allocation2 + $0x2e8] sm:$0xff] %v479_v47  ;;  %v548_v47 = vld [vmem:[%s1881_s4 + $0xb0] sm:$0x7f] }
  0xf1   : > { %513 = vst [vmem:[#allocation2 + $0x2f0] sm:$0xff] %v480_v48  ;;  %v549_v48 = vld [vmem:[%s1881_s4 + $0xb8] sm:$0x7f] }
  0xf2   : > { %514 = vst [vmem:[#allocation2 + $0x2f8] sm:$0xff] %v481_v49  ;;  %v550_v49 = vld [vmem:[%s1881_s4 + $0xc0] sm:$0x7f] }
  0xf3   : > { %515 = vst [vmem:[#allocation2 + $0x300] sm:$0xff] %v482_v50  ;;  %v551_v50 = vld [vmem:[%s1881_s4 + $0xc8] sm:$0x7f] }
  0xf4   : > { %516 = vst [vmem:[#allocation2 + $0x308] sm:$0xff] %v483_v51  ;;  %v552_v51 = vld [vmem:[%s1881_s4 + $0xd0] sm:$0x7f] }
  0xf5   : > { %517 = vst [vmem:[#allocation2 + $0x310] sm:$0xff] %v484_v52  ;;  %v553_v52 = vld [vmem:[%s1881_s4 + $0xd8] sm:$0x7f] }
  0xf6   : > { %518 = vst [vmem:[#allocation2 + $0x328] sm:$0xff] %v485_v53  ;;  %v554_v53 = vld [vmem:[%s1881_s4 + $0xe0] sm:$0x7f] }
  0xf7   : > { %519 = vst [vmem:[#allocation2 + $0x330] sm:$0xff] %v486_v54  ;;  %v555_v54 = vld [vmem:[%s1881_s4 + $0xe8] sm:$0x7f] }
  0xf8   : > { %520 = vst [vmem:[#allocation2 + $0x338] sm:$0xff] %v487_v55  ;;  %v556_v55 = vld [vmem:[%s1881_s4 + $0xf0] sm:$0x7f] }
  0xf9   : > { %521 = vst [vmem:[#allocation2 + $0x340] sm:$0xff] %v488_v56  ;;  %v557_v56 = vld [vmem:[%s1881_s4 + $0xf8] sm:$0x7f] }
  0xfa   : > { %522 = vst [vmem:[#allocation2 + $0x348] sm:$0xff] %v489_v57  ;;  %v591_v57 = vld [vmem:[%s1881_s4 + $0x1] sm:$0x7f] }
  0xfb   : > { %523 = vst [vmem:[#allocation2 + $0x350] sm:$0xff] %v490_v58  ;;  %v592_v58 = vld [vmem:[%s1881_s4 + $0x9] sm:$0x7f] }
  0xfc   : > { %524 = vst [vmem:[#allocation2 + $0x358] sm:$0xff] %v491_v59  ;;  %v593_v59 = vld [vmem:[%s1881_s4 + $0x11] sm:$0x7f] }
  0xfd   : > { %525 = vst [vmem:[#allocation2 + $0x360] sm:$0xff] %v492_v60  ;;  %v594_v60 = vld [vmem:[%s1881_s4 + $0x19] sm:$0x7f] }
  0xfe   : > { %559 = vst [vmem:[#allocation2 + $0x59] sm:$0x7f] %v526_v61  ;;  %v595_v61 = vld [vmem:[%s1881_s4 + $0x21] sm:$0x7f] }
  0xff   : > { %560 = vst [vmem:[#allocation2 + $0x61] sm:$0x7f] %v527_v62  ;;  %v596_v62 = vld [vmem:[%s1881_s4 + $0x29] sm:$0x7f] }
 0x100   : > { %561 = vst [vmem:[#allocation2 + $0x69] sm:$0x7f] %v528_v63  ;;  %v597_v63 = vld [vmem:[%s1881_s4 + $0x31] sm:$0x7f] }
 0x101   : > { %562 = vst [vmem:[#allocation2 + $0x71] sm:$0x7f] %v529_v0  ;;  %v598_v0 = vld [vmem:[%s1881_s4 + $0x39] sm:$0x7f] }
 0x102   : > { %563 = vst [vmem:[#allocation2 + $0x79] sm:$0x7f] %v530_v29  ;;  %v599_v29 = vld [vmem:[%s1881_s4 + $0x41] sm:$0x7f] }
 0x103   : > { %564 = vst [vmem:[#allocation2 + $0x81] sm:$0x7f] %v531_v30  ;;  %v600_v30 = vld [vmem:[%s1881_s4 + $0x49] sm:$0x7f] }
 0x104   : > { %565 = vst [vmem:[#allocation2 + $0x89] sm:$0x7f] %v532_v31  ;;  %v601_v31 = vld [vmem:[%s1881_s4 + $0x51] sm:$0x7f] }
 0x105   : > { %566 = vst [vmem:[#allocation2 + $0x91] sm:$0x7f] %v533_v32  ;;  %v602_v32 = vld [vmem:[%s1881_s4 + $0x59] sm:$0x7f] }
 0x106   : > { %567 = vst [vmem:[#allocation2 + $0xa9] sm:$0x7f] %v534_v33  ;;  %v603_v33 = vld [vmem:[%s1881_s4 + $0x61] sm:$0x7f] }
 0x107   : > { %568 = vst [vmem:[#allocation2 + $0xb1] sm:$0x7f] %v535_v34  ;;  %v604_v34 = vld [vmem:[%s1881_s4 + $0x69] sm:$0x7f] }
 0x108   : > { %569 = vst [vmem:[#allocation2 + $0xb9] sm:$0x7f] %v536_v35  ;;  %v605_v35 = vld [vmem:[%s1881_s4 + $0x71] sm:$0x7f] }
 0x109   : > { %570 = vst [vmem:[#allocation2 + $0xc1] sm:$0x7f] %v537_v36  ;;  %v606_v36 = vld [vmem:[%s1881_s4 + $0x79] sm:$0x7f] }
 0x10a   : > { %571 = vst [vmem:[#allocation2 + $0xc9] sm:$0x7f] %v538_v37  ;;  %v607_v37 = vld [vmem:[%s1881_s4 + $0x81] sm:$0x7f] }
 0x10b   : > { %572 = vst [vmem:[#allocation2 + $0xd1] sm:$0x7f] %v539_v38  ;;  %v608_v38 = vld [vmem:[%s1881_s4 + $0x89] sm:$0x7f] }
 0x10c   : > { %573 = vst [vmem:[#allocation2 + $0xd9] sm:$0x7f] %v540_v39  ;;  %v609_v39 = vld [vmem:[%s1881_s4 + $0x91] sm:$0x7f] }
 0x10d   : > { %574 = vst [vmem:[#allocation2 + $0xe1] sm:$0x7f] %v541_v40  ;;  %v610_v40 = vld [vmem:[%s1881_s4 + $0x99] sm:$0x7f] }
 0x10e   : > { %575 = vst [vmem:[#allocation2 + $0xf9] sm:$0x7f] %v542_v41  ;;  %v611_v41 = vld [vmem:[%s1881_s4 + $0xa1] sm:$0x7f] }
 0x10f   : > { %576 = vst [vmem:[#allocation2 + $0x101] sm:$0x7f] %v543_v42  ;;  %v612_v42 = vld [vmem:[%s1881_s4 + $0xa9] sm:$0x7f] }
 0x110   : > { %577 = vst [vmem:[#allocation2 + $0x109] sm:$0x7f] %v544_v43  ;;  %v613_v43 = vld [vmem:[%s1881_s4 + $0xb1] sm:$0x7f] }
 0x111   : > { %578 = vst [vmem:[#allocation2 + $0x111] sm:$0x7f] %v545_v44  ;;  %v614_v44 = vld [vmem:[%s1881_s4 + $0xb9] sm:$0x7f] }
 0x112   : > { %579 = vst [vmem:[#allocation2 + $0x119] sm:$0x7f] %v546_v45  ;;  %v615_v45 = vld [vmem:[%s1881_s4 + $0xc1] sm:$0x7f] }
 0x113   : > { %580 = vst [vmem:[#allocation2 + $0x121] sm:$0x7f] %v547_v46  ;;  %v616_v46 = vld [vmem:[%s1881_s4 + $0xc9] sm:$0x7f] }
 0x114   : > { %581 = vst [vmem:[#allocation2 + $0x129] sm:$0x7f] %v548_v47  ;;  %v617_v47 = vld [vmem:[%s1881_s4 + $0xd1] sm:$0x7f] }
 0x115   : > { %582 = vst [vmem:[#allocation2 + $0x131] sm:$0x7f] %v549_v48  ;;  %v618_v48 = vld [vmem:[%s1881_s4 + $0xd9] sm:$0x7f] }
 0x116   : > { %583 = vst [vmem:[#allocation2 + $0x149] sm:$0x7f] %v550_v49  ;;  %v619_v49 = vld [vmem:[%s1881_s4 + $0xe1] sm:$0x7f] }
 0x117   : > { %584 = vst [vmem:[#allocation2 + $0x151] sm:$0x7f] %v551_v50  ;;  %v620_v50 = vld [vmem:[%s1881_s4 + $0xe9] sm:$0x7f] }
 0x118   : > { %585 = vst [vmem:[#allocation2 + $0x159] sm:$0x7f] %v552_v51  ;;  %v621_v51 = vld [vmem:[%s1881_s4 + $0xf1] sm:$0x7f] }
 0x119   : > { %586 = vst [vmem:[#allocation2 + $0x161] sm:$0x7f] %v553_v52  ;;  %v622_v52 = vld [vmem:[%s1881_s4 + $0xf9] sm:$0x7f] }
 0x11a   : > { %587 = vst [vmem:[#allocation2 + $0x169] sm:$0x7f] %v554_v53 }
 0x11b   : > { %588 = vst [vmem:[#allocation2 + $0x171] sm:$0x7f] %v555_v54 }
 0x11c   : > { %589 = vst [vmem:[#allocation2 + $0x179] sm:$0x7f] %v556_v55 }
 0x11d   : > { %590 = vst [vmem:[#allocation2 + $0x181] sm:$0x7f] %v557_v56 }
 0x11e   : > { %624 = vst [vmem:[#allocation2 + $0x418] sm:$0x7f] %v591_v57 }
 0x11f   : > { %625 = vst [vmem:[#allocation2 + $0x420] sm:$0x7f] %v592_v58 }
 0x120   : > { %626 = vst [vmem:[#allocation2 + $0x428] sm:$0x7f] %v593_v59 }
 0x121   : > { %627 = vst [vmem:[#allocation2 + $0x430] sm:$0x7f] %v594_v60 }
 0x122   : > { %628 = vst [vmem:[#allocation2 + $0x438] sm:$0x7f] %v595_v61 }
 0x123   : > { %629 = vst [vmem:[#allocation2 + $0x440] sm:$0x7f] %v596_v62 }
 0x124   : > { %630 = vst [vmem:[#allocation2 + $0x448] sm:$0x7f] %v597_v63 }
 0x125   : > { %631 = vst [vmem:[#allocation2 + $0x450] sm:$0x7f] %v598_v0 }
 0x126   : > { %632 = vst [vmem:[#allocation2 + $0x468] sm:$0x7f] %v599_v29 }
 0x127   : > { %633 = vst [vmem:[#allocation2 + $0x470] sm:$0x7f] %v600_v30 }
 0x128   : > { %634 = vst [vmem:[#allocation2 + $0x478] sm:$0x7f] %v601_v31 }
 0x129   : > { %635 = vst [vmem:[#allocation2 + $0x480] sm:$0x7f] %v602_v32 }
 0x12a   : > { %636 = vst [vmem:[#allocation2 + $0x488] sm:$0x7f] %v603_v33 }
 0x12b   : > { %637 = vst [vmem:[#allocation2 + $0x490] sm:$0x7f] %v604_v34 }
 0x12c   : > { %638 = vst [vmem:[#allocation2 + $0x498] sm:$0x7f] %v605_v35 }
 0x12d   : > { %639 = vst [vmem:[#allocation2 + $0x4a0] sm:$0x7f] %v606_v36 }
 0x12e   : > { %640 = vst [vmem:[#allocation2 + $0x4b8] sm:$0x7f] %v607_v37 }
 0x12f   : > { %641 = vst [vmem:[#allocation2 + $0x4c0] sm:$0x7f] %v608_v38 }
 0x130   : > { %642 = vst [vmem:[#allocation2 + $0x4c8] sm:$0x7f] %v609_v39 }
 0x131   : > { %643 = vst [vmem:[#allocation2 + $0x4d0] sm:$0x7f] %v610_v40 }
 0x132   : > { %644 = vst [vmem:[#allocation2 + $0x4d8] sm:$0x7f] %v611_v41 }
 0x133   : > { %645 = vst [vmem:[#allocation2 + $0x4e0] sm:$0x7f] %v612_v42 }
 0x134   : > { %646 = vst [vmem:[#allocation2 + $0x4e8] sm:$0x7f] %v613_v43 }
 0x135   : > { %647 = vst [vmem:[#allocation2 + $0x4f0] sm:$0x7f] %v614_v44 }
 0x136   : > { %648 = vst [vmem:[#allocation2 + $0x508] sm:$0x7f] %v615_v45 }
 0x137   : > { %649 = vst [vmem:[#allocation2 + $0x510] sm:$0x7f] %v616_v46 }
 0x138   : > { %650 = vst [vmem:[#allocation2 + $0x518] sm:$0x7f] %v617_v47 }
 0x139   : > { %651 = vst [vmem:[#allocation2 + $0x520] sm:$0x7f] %v618_v48 }
 0x13a   : > { %652 = vst [vmem:[#allocation2 + $0x528] sm:$0x7f] %v619_v49 }
 0x13b   : > { %653 = vst [vmem:[#allocation2 + $0x530] sm:$0x7f] %v620_v50 }
 0x13c   : > { %654 = vst [vmem:[#allocation2 + $0x538] sm:$0x7f] %v621_v51 }
 0x13d   : > { %655 = vst [vmem:[#allocation2 + $0x540] sm:$0x7f] %v622_v52 }
 0x13e LB: >> { %s2235_s26 = smov 0   ;;  %s1664_s27 = sphi %s2230_s27, %s727_s27  }
 0x13f LB: >>> { %s735_s7 = smul.u32 80, %s1664_s27  ;;  %s1210_s12 = sshll.u32 %s1668_s26, 3  ;;  %s1668_s26 = sphi %s2235_s26, %s733_s26  }
 0x140   : >>> { %s1263_s29 = sshll.u32 %s1664_s27, 6  ;;  %s733_s26 = sadd.s32 1, %s1668_s26  }
 0x141   : >>> { %s736_s3 = sadd.s32 %s1210_s12, %s735_s7  ;;  %s880_s25 = sadd.s32 %s1263_s29, %s1210_s12 }
 0x142   : >>> { %s2244_s24 = scalar_lea.vmem [#allocation2], %s736_s3  ;;  %s881_s19 = scalar_lea.vmem %s2228_s11, %s880_s25 [#allocation9] }
 0x143   : >>> { %p730_p7 = scmp.ge.s32.totalorder %s733_s26, 8  }
 0x144   : >>> { %v738_v53 = vld [vmem:[%s2244_s24] sm:$0xff]  ;;  %v1216_v59 = vld [vmem:[%s2244_s24 + $0x8] sm:$0xff]  ;;  %v1228_v0 = vld [vmem:[%s2244_s24 + $0x50] sm:$0xff]  ;;  %s727_s27 = sadd.s32 (%p730_p7), 1, %s1664_s27  }
 0x145   : >>> { %v1212_v54 = vld [vmem:[%s2244_s24 + $0x1e0] sm:$0xff]  ;;  %v739_v56 = vmul.f32 %v1904_v1, %v738_v53  ;;  %v1218_v60 = vld [vmem:[%s2244_s24 + $0x1e8] sm:$0xff]  ;;  %v755_v63 = vmul.f32 %v1913_v4, %v1216_v59  ;;  %v1230_v29 = vld [vmem:[%s2244_s24 + $0x230] sm:$0xff]  ;;  %v789_v31 = vmul.f32 %v1931_v10, %v1228_v0  ;;  %p724_p8 = scmp.ge.s32.totalorder (%p730_p7), %s727_s27, 4  }
 0x146   : >>> { %v1214_v55 = vld [vmem:[%s2244_s24 + $0x3c0] sm:$0xff]  ;;  %v743_v57 = vmul.f32 %v1907_v2, %v1212_v54  ;;  %v1220_v61 = vld [vmem:[%s2244_s24 + $0x3c8] sm:$0xff]  ;;  %v1232_v30 = vld [vmem:[%s2244_s24 + $0x410] sm:$0xff]  ;;  %v793_v32 = vmul.f32 %v1934_v11, %v1230_v29  ;;  %v760_v36 = vmul.f32 %v1916_v5, %v1218_v60 }
 0x147   : >>> { %v748_v58 = vmul.f32 %v1910_v3, %v1214_v55  ;;  %v798_v33 = vmul.f32 %v1937_v12, %v1232_v30  ;;  %v1234_v34 = vld [vmem:[%s2244_s24 + $0x58] sm:$0xff]  ;;  %v1222_v37 = vld [vmem:[%s2244_s24 + $0x10] sm:$0xff]  ;;  %v765_v39 = vmul.f32 %v1919_v6, %v1220_v61  ;;  %v1246_v42 = vld [vmem:[%s2244_s24 + $0xa0] sm:$0xff] }
 0x148   : >>> { %v744_v62 = vadd.f32 %v743_v57, %v739_v56  ;;  %v1236_v38 = vld [vmem:[%s2244_s24 + $0x238] sm:$0xff]  ;;  %v794_v40 = vadd.f32 %v793_v32, %v789_v31  ;;  %v803_v41 = vmul.f32 %v1940_v13, %v1234_v34  ;;  %v1248_v43 = vld [vmem:[%s2244_s24 + $0x280] sm:$0xff]  ;;  %v835_v47 = vmul.f32 %v1958_v19, %v1246_v42  ;;  %v1252_v50 = vld [vmem:[%s2244_s24 + $0xa8] sm:$0xff] }
 0x149   : >>> { %v1250_v44 = vld [vmem:[%s2244_s24 + $0x460] sm:$0xff]  ;;  %v1238_v46 = vld [vmem:[%s2244_s24 + $0x418] sm:$0xff]  ;;  %v839_v48 = vmul.f32 %v1961_v20, %v1248_v43  ;;  %v1224_v51 = vld [vmem:[%s2244_s24 + $0x1f0] sm:$0xff]  ;;  %v808_v53 = vmul.f32 %v1943_v14, %v1236_v38  ;;  %v772_v56 = vmul.f32 %v1922_v7, %v1222_v37  ;;  %v849_v59 = vmul.f32 %v1967_v22, %v1252_v50 }
 0x14a   : >>> { %v749_v35 = vadd.f32 %v748_v58, %v744_v62  ;;  %v844_v49 = vmul.f32 %v1964_v21, %v1250_v44  ;;  %v799_v52 = vadd.f32 %v798_v33, %v794_v40  ;;  %v1254_v54 = vld [vmem:[%s2244_s24 + $0x288] sm:$0xff]  ;;  %v1240_v57 = vld [vmem:[%s2244_s24 + $0x60] sm:$0xff]  ;;  %v1226_v60 = vld [vmem:[%s2244_s24 + $0x3d0] sm:$0xff]  ;;  %v813_v62 = vmul.f32 %v1946_v15, %v1238_v46 }
 0x14b   : >>> { %v840_v58 = vadd.f32 %v839_v48, %v835_v47  ;;  %v777_v29 = vmul.f32 %v1925_v8, %v1224_v51  ;;  %v1242_v30 = vld [vmem:[%s2244_s24 + $0x240] sm:$0xff]  ;;  %v854_v32 = vmul.f32 %v1970_v23, %v1254_v54  ;;  %v818_v34 = vmul.f32 %v1949_v16, %v1240_v57  ;;  %v1260_v43 = vld [vmem:[%s2244_s24 + $0x290] sm:$0xff] }
 0x14c   : >>> { %v756_v45 = vadd.f32 %v755_v63, %v749_v35  ;;  %v804_v61 = vadd.f32 %v803_v41, %v799_v52  ;;  %v1256_v63 = vld [vmem:[%s2244_s24 + $0x468] sm:$0xff]  ;;  %v1258_v35 = vld [vmem:[%s2244_s24 + $0xb0] sm:$0xff]  ;;  %v782_v37 = vmul.f32 %v1928_v9, %v1226_v60  ;;  %v1244_v38 = vld [vmem:[%s2244_s24 + $0x420] sm:$0xff]  ;;  %v823_v42 = vmul.f32 %v1952_v17, %v1242_v30 }
 0x14d   : >>> { %v845_v31 = vadd.f32 %v844_v49, %v840_v58  ;;  %v859_v41 = vmul.f32 %v1973_v24, %v1256_v63  ;;  %v864_v46 = vmul.f32 %v1976_v25, %v1258_v35  ;;  %v828_v48 = vmul.f32 %v1955_v18, %v1244_v38  ;;  %v1262_v49 = vld [vmem:[%s2244_s24 + $0x470] sm:$0xff] }
 0x14e   : >>> { %v761_v55 = vadd.f32 %v760_v36, %v756_v45  ;;  %v809_v33 = vadd.f32 %v808_v53, %v804_v61  ;;  %v869_v52 = vmul.f32 %v1979_v26, %v1260_v43 }
 0x14f   : >>> { %v850_v40 = vadd.f32 %v849_v59, %v845_v31 }
 0x150   : >>> { %v766_v0 = vadd.f32 %v765_v39, %v761_v55  ;;  %v814_v39 = vadd.f32 %v813_v62, %v809_v33  ;;  %v874_v55 = vmul.f32 %v1982_v27, %v1262_v49 }
 0x151   : >>> { %v855_v45 = vadd.f32 %v854_v32, %v850_v40 }
 0x152   : >>> { %v773_v36 = vadd.f32 %v772_v56, %v766_v0  ;;  %v819_v47 = vadd.f32 %v818_v34, %v814_v39 }
 0x153   : >>> { %v860_v51 = vadd.f32 %v859_v41, %v855_v45 }
 0x154   : >>> { %v778_v44 = vadd.f32 %v777_v29, %v773_v36  ;;  %v824_v53 = vadd.f32 %v823_v42, %v819_v47 }
 0x155   : >>> { %v865_v54 = vadd.f32 %v864_v46, %v860_v51 }
 0x156   : >>> { %v783_v50 = vadd.f32 %v782_v37, %v778_v44  ;;  %v829_v57 = vadd.f32 %v828_v48, %v824_v53 }
 0x157   : >>> { %v870_v58 = vadd.f32 %v869_v52, %v865_v54 }
 0x158   : >>> { %v876_v56 = vadd.f32 %v1986_v28, %v783_v50 }
 0x159   : >>> { %v875_v60 = vadd.f32 %v874_v55, %v870_v58 }
 0x15a   : >>> { %v877_v59 = vadd.f32 %v876_v56, %v829_v57  ;;  %732 = sbr.rel (!%p730_p7) target bundleno = 319 (0x13f), region = 154 }
 0x15c   : >>> { %v878_v61 = vadd.f32 %v877_v59, %v875_v60 }
 0x15e   : >>> { %882 = vst [vmem:[%s881_s19] sm:$0xff] %v878_v61 }
 0x15f   : > { %726 = sbr.rel (!%p724_p8) target bundleno = 318 (0x13e), region = 165  ;;  %s2404_s28 = sld [smem:[#allocation15_spill]] (%p724_p8) }
 0x160   : > { %s2405_s21 = sld [smem:[#allocation14_spill]] (%p724_p8)  ;;  %s897_s10 = sshll.u32 (%p724_p8), %s2228_s11, 4  ;;  %s898_s10 = int_to_ptr.vmem [resolvable:$true] %s897_s10 }
 0x161   : > { %s2407_s30 = sld [smem:[#allocation24_spill]] (%p724_p8)  ;;  %s884_s7 = scalar_lea.sflag (%p724_p8), [#allocation5], %s1875_s18 }
 0x165   : > { %s1265_s4 = sshll.u32 %s2404_s28, 6 }
 0x166   : > { %s894_s15 = sadd.s32 %s2405_s21, %s1265_s4 }
 0x167   : > { %s1266_s6 = sshll.u32 %s894_s15, 3  ;;  %s1546_s11 = scalar_lea.hbm %s2407_s30, 1024 }
 0x168   : > { %s896_s23 = scalar_lea.hbm %s2407_s30, %s1266_s6 }
 0x169   : > { %s899_s26 = sshll.u32 %s896_s23, 4  ;;  %s900_s26 = int_to_ptr.hbm [resolvable:$true] %s899_s26 }
 0x16a   : > { %s1540_s12 = sshra.s32 %s900_s26, 4  ;;  %s1541_s12 = int_to_ptr.hbm [resolvable:$true] %s1540_s12 }
 0x16b   : > { %s1542_s27 = scalar_lea.hbm %s1541_s12, 256  ;;  %p1547_p4 = scmp.lt.s32.totalorder %s1541_s12, %s2407_s30 }
 0x16c   : > { %p1543_p9 = scmp.ne.s32.totalorder %s1541_s12, %s1542_s27  ;;  %p1548_p5 = scmp.lt.s32.totalorder %s1546_s11, %s1542_s27 }
 0x16e   : > { %p1544_p12 = pnand %p1543_p9, %p1838_p0  ;;  %p1549_p6 = por %p1548_p5, %p1547_p4 }
 0x170   : > { %p1545_p3 = pneg %p1544_p12 }
 0x172   : > { %p1550_p10 = pnand %p1549_p6, %p1545_p3 }
 0x174   : > { %1553 = shalt.err (!%p1550_p10)
}
 0x175   : > { %s1676_s18 = smov 128   ;;  %s1677_s19 = smov 256  }
 0x176   : > { %s1678_s28 = smov 8  }
 0x177   : > { %1277 = dma.vmem_to_hbm [thread:$0]  (%p1838_p0), %s898_s10, 4096, %s900_s26, %s884_s7, %s1676_s18, %s1677_s19, %s1678_s28  }
 0x178 PF: > { %s2408_s21 = sld [smem:[#allocation13_spill]]  ;;  %p1294_p11 = scmp.ge.s32.totalorder %s1660_s22, 2 }
 0x17a   : > { %p1290_p2 = pnand %p1294_p11, %p1846_p1 }
 0x17c   : > { %p1291_p13 = pneg %p1290_p2 }
 0x17e   : > { %s914_s4 = sand.u32 1, %s2408_s21  }
 0x17f   : > { %s915_s15 = scalar_lea.sflag [#allocation5], %s914_s4 }
 0x180   : > { %1615 = dma.done.wait (%p1291_p13), %s915_s15, 4096  }
 0x181   : > { %1617 = vsyncadd (%p1291_p13), %s915_s15, 4294963200  ;;  %s22_s22 = sadd.s32 1, %s1660_s22   ;;  %s2409_s6 = sld [smem:[#allocation19_spill]] }
 0x182   : > { %p19_p7 = scmp.ge.s32.totalorder %s22_s22, 6   ;;  %s2410_s9 = sld [smem:[#allocation22_spill]] }
 0x183   : > { %s2411_s19 = sld [smem:[#allocation16_spill]]  ;;  %s2414_s12 = smov %s1624_s13 }
 0x184   : > { %s2412_s10 = sld [smem:[#allocation17_spill]]  ;;  %s2415_s13 = smov %s1628_s14 }
 0x185   : > { %s2413_s21 = sld [smem:[#allocation20_spill]]  ;;  %s2417_s15 = smov %s1636_s16 }
 0x186   : > { %s2418_s16 = smov %s1640_s17  ;;  %s2420_s18 = smov %s1652_s20 }
 0x187   : > { %s2416_s14 = smov %s2409_s6  ;;  %21 = sbr.rel (!%p19_p7) target bundleno = 14 (0xe), region = 176 }
 0x188   : > { %s2419_s17 = smov %s2410_s9 }
 0x18a   : > { %s2421_s20 = smov %s2412_s10 }
 0x18c   :  { %921 = vsyncpa [#allocation4], 1 }
 0x18d   :  { %923 = vsyncpa [#allocation4 + $0x1], 1 }
 0x18e   :  { %924 = vsyncpa [#allocation7], 1 }
 0x18f   :  { %926 = vsyncpa [#allocation7 + $0x1], 1 }
 0x190   :  { %927 = vsyncpa [#allocation5], 1 }
 0x191   :  { %929 = vsyncpa [#allocation5 + $0x1], 1 }

</bundles_post_ra>
